<compile_context>
chip_gen: v6e
topology: v6e:2x2x1
jax: 0.10.0
libtpu: 0.0.40
codegen_flags: <defaults>
</compile_context>

<pallas_src>
import jax
import jax.numpy as jnp
from jax.experimental import pallas as pl
from jax.experimental.pallas import tpu as pltpu


def _round_up(x, m):
    return (x + m - 1) // m * m


def nn_forward_kernel(x_ref, wb_ref, bb_ref, w1_ref, b1_ref, o_ref, acc_ref):
    """K-tiled fused forward: backbone matmul (accumulated) -> relu -> fc1 -> sigmoid.

    x_ref  : (B_pad, tk)     bf16   flattened-input K-tile
    wb_ref : (tk, N_pad)     bf16   backbone-weight K-tile
    bb_ref : (1, N_pad)      f32    backbone bias (zero-padded)
    w1_ref : (1, N_pad)      f32    fc1 weight as a lane-dense row (zero-padded)
    b1_ref : (1, 1)          f32    fc1 bias (SMEM)
    o_ref  : (B_pad, 1)      f32    sigmoid output
    acc_ref: (B_pad, N_pad)  f32    VMEM accumulator scratch
    """
    k = pl.program_id(0)

    @pl.when(k == 0)
    def _init():
        acc_ref[...] = jnp.zeros_like(acc_ref)

    # Backbone matmul tile on the MXU, f32 accumulation.
    acc_ref[...] += jnp.dot(x_ref[...], wb_ref[...],
                            preferred_element_type=jnp.float32)

    @pl.when(k == pl.num_programs(0) - 1)
    def _epilogue():
        # Bias + ReLU in f32 (matches F.relu in the reference forward).
        feats = jnp.maximum(acc_ref[...] + bb_ref[...], 0.0)          # (B_pad, N_pad)
        # fc1: Linear(1000, 1) as a VPU multiply + lane reduce (MXU would use
        # a single output column). Pad columns of w1/feats are zero.
        logit = jnp.sum(feats * w1_ref[...], axis=-1, keepdims=True)  # (B_pad, 1)
        logit = logit + b1_ref[0, 0]
        # Sigmoid in f32. (pl.reciprocal(..., approx=True) would push the divide
        # onto the EUP slot; kept exact here — the kernel is HBM-bound anyway.)
        o_ref[...] = (1.0 / (1.0 + jnp.exp(-logit))).astype(o_ref.dtype)


def nn_forward(x_nchw, wb, bb, w1, b1, *, tk=512):
    """Flatten NCHW input, pad/cast, and invoke the K-tiled fused Pallas kernel.

    wb: (K, 1000) backbone weight, bb: (1, 1000) backbone bias,
    w1: (1000, 1) fc1 weight (in, out), b1: (1, 1) fc1 bias.
    """
    B = x_nchw.shape[0]
    x_flat = x_nchw.reshape(B, -1)                     # (B, K), row-major == torch flatten
    K = x_flat.shape[1]
    N = wb.shape[1]                                    # 1000

    N_pad = _round_up(N, 128)                          # 1000 -> 1024 (lane-dense)
    K_pad = _round_up(K, tk)                           # multiple of the K tile
    B_pad = _round_up(B, 16)                           # bf16 sublane packing

    # bf16 for the big matmul operands (halves HBM traffic); zero pads so the
    # extra rows/cols contribute nothing.
    x_p = jnp.zeros((B_pad, K_pad), jnp.bfloat16).at[:B, :K].set(
        x_flat.astype(jnp.bfloat16))
    wb_p = jnp.zeros((K_pad, N_pad), jnp.bfloat16).at[:K, :N].set(
        wb.astype(jnp.bfloat16))
    # Tiny parameters stay f32 (epilogue math stays f32).
    bb_p = jnp.zeros((1, N_pad), jnp.float32).at[:, :N].set(bb.astype(jnp.float32))
    w1_p = jnp.zeros((1, N_pad), jnp.float32).at[:, :N].set(
        w1.reshape(1, -1).astype(jnp.float32))
    b1_p = b1.reshape(1, 1).astype(jnp.float32)

    grid = (K_pad // tk,)

    out = pl.pallas_call(
        nn_forward_kernel,
        out_shape=jax.ShapeDtypeStruct((B_pad, 1), jnp.float32),
        grid=grid,
        in_specs=[
            pl.BlockSpec((B_pad, tk), lambda k: (0, k)),       # x K-tile
            pl.BlockSpec((tk, N_pad), lambda k: (k, 0)),       # wb K-tile (pipelined)
            pl.BlockSpec((1, N_pad), lambda k: (0, 0)),        # backbone bias
            pl.BlockSpec((1, N_pad), lambda k: (0, 0)),        # fc1 weight row
            pl.BlockSpec(memory_space=pltpu.SMEM),             # fc1 bias scalar
        ],
        out_specs=pl.BlockSpec((B_pad, 1), lambda k: (0, 0)),
        scratch_shapes=[pltpu.VMEM((B_pad, N_pad), jnp.float32)],
        compiler_params=pltpu.CompilerParams(
            dimension_semantics=("arbitrary",),                # reduction axis
            vmem_limit_bytes=64 * 1024 * 1024,
        ),
    )(x_p, wb_p, bb_p, w1_p, b1_p)

    return out[:B]


if __name__ == "__main__":
    # Small, deterministic example: batch=2, channels=3, spatial=16x16 (NCHW).
    B, C, H, W = 2, 3, 16, 16
    K = C * H * W          # 768 flattened input features
    F_BACKBONE = 1000      # backbone output features (ImageNet-style 1000)

    key = jax.random.PRNGKey(0)
    k_x, k_wb, k_bb, k_w1, k_b1 = jax.random.split(key, 5)

    x = jax.random.normal(k_x, (B, C, H, W), dtype=jnp.float32)

    # Synthetic backbone parameters (stand-in for net_pretrained).
    wb = jax.random.normal(k_wb, (K, F_BACKBONE), dtype=jnp.float32) * 0.02
    bb = jax.random.normal(k_bb, (1, F_BACKBONE), dtype=jnp.float32) * 0.02

    # fc1 = nn.Linear(1000, 1): torch weight (1, 1000) -> stored as (1000, 1).
    w1 = jax.random.normal(k_w1, (F_BACKBONE, 1), dtype=jnp.float32) * 0.02
    b1 = jax.random.normal(k_b1, (1, 1), dtype=jnp.float32) * 0.02

    out = nn_forward(x, wb, bb, w1, b1)
    out = jax.block_until_ready(out)

    # Pure-JAX reference with the same bf16-rounded matmul operands.
    x_bf = x.reshape(B, -1).astype(jnp.bfloat16).astype(jnp.float32)
    wb_bf = wb.astype(jnp.bfloat16).astype(jnp.float32)
    feats_ref = jnp.maximum(x_bf @ wb_bf + bb, 0.0)
    out_ref = jax.nn.sigmoid(feats_ref @ w1 + b1)

    assert out.shape == (B, 1)
    assert jnp.allclose(out, out_ref, atol=1e-4, rtol=1e-4), (
        f"max abs err {jnp.max(jnp.abs(out - out_ref))}")

    print("KERNEL_OK")
</pallas_src>

<mosaic_0001>
module attributes {stable_mosaic.version = 11 : i64} {
  func.func @nn_forward_kernel(%arg0: i32, %arg1: memref<16x512xbf16, #tpu.memory_space<vmem>>, %arg2: memref<512x1024xbf16, #tpu.memory_space<vmem>>, %arg3: memref<1x1024xf32, #tpu.memory_space<vmem>>, %arg4: memref<1x1024xf32, #tpu.memory_space<vmem>>, %arg5: memref<1x1xf32, #tpu.memory_space<smem>>, %arg6: memref<16x1xf32, #tpu.memory_space<vmem>>, %arg7: memref<16x1024xf32, #tpu.memory_space<vmem>>) attributes {dimension_semantics = [#tpu.dimension_semantics<arbitrary>], iteration_bounds = array<i64: 2>, scalar_prefetch = 0 : i64, scratch_operands = 1 : i64, tpu.core_type = #tpu.core_type<tc>, window_params = [{transform_indices = @transform_0, window_bounds = array<i64: 16, 512>}, {transform_indices = @transform_1, window_bounds = array<i64: 512, 1024>}, {pipeline_mode = #tpu.pipeline_mode<synchronous>, transform_indices = @transform_2, window_bounds = array<i64: 1, 1024>}, {pipeline_mode = #tpu.pipeline_mode<synchronous>, transform_indices = @transform_3, window_bounds = array<i64: 1, 1024>}, {transform_indices = @transform_4, window_bounds = array<i64: 1, 1>}, {pipeline_mode = #tpu.pipeline_mode<synchronous>, transform_indices = @transform_5, window_bounds = array<i64: 16, 1>}]} {
    %c0_i32 = arith.constant 0 : i32
    %0 = arith.cmpi eq, %arg0, %c0_i32 : i32
    %1 = arith.extui %0 : i1 to i32
    %c0_i32_0 = arith.constant 0 : i32
    %2 = arith.cmpi ne, %1, %c0_i32_0 : i32
    scf.if %2 {
      %cst_9 = arith.constant 0.000000e+00 : f32
      %12 = vector.broadcast %cst_9 : f32 to vector<16x1024xf32>
      %c0_10 = arith.constant 0 : index
      %c0_11 = arith.constant 0 : index
      %13 = vector.load %arg7[%c0_10, %c0_11] : memref<16x1024xf32, #tpu.memory_space<vmem>>, vector<16x1024xf32>
      tpu.vector_store %arg7[%c0_10, %c0_11], %12 {strides = array<i32>} : memref<16x1024xf32, #tpu.memory_space<vmem>>, vector<16x1024xf32>,
    } else {
    }
    %c0 = arith.constant 0 : index
    %c0_1 = arith.constant 0 : index
    %3 = vector.load %arg7[%c0, %c0_1] : memref<16x1024xf32, #tpu.memory_space<vmem>>, vector<16x1024xf32>
    %c0_2 = arith.constant 0 : index
    %c0_3 = arith.constant 0 : index
    %4 = vector.load %arg1[%c0_2, %c0_3] : memref<16x512xbf16, #tpu.memory_space<vmem>>, vector<16x512xbf16>
    %c0_4 = arith.constant 0 : index
    %c0_5 = arith.constant 0 : index
    %5 = vector.load %arg2[%c0_4, %c0_5] : memref<512x1024xbf16, #tpu.memory_space<vmem>>, vector<512x1024xbf16>
    %cst = arith.constant dense<0.000000e+00> : vector<16x1024xf32>
    %6 = tpu.matmul %4, %5, %cst {dimension_numbers = #tpu.dot_dimension_numbers<[1], [0], [0], [1], [0, 0, 1, 1], [], []>} : vector<16x512xbf16>, vector<512x1024xbf16>, vector<16x1024xf32> -> vector<16x1024xf32>
    %7 = arith.addf %3, %6 : vector<16x1024xf32>
    %c0_6 = arith.constant 0 : index
    %c0_7 = arith.constant 0 : index
    %8 = vector.load %arg7[%c0_6, %c0_7] : memref<16x1024xf32, #tpu.memory_space<vmem>>, vector<16x1024xf32>
    tpu.vector_store %arg7[%c0_6, %c0_7], %7 {strides = array<i32>} : memref<16x1024xf32, #tpu.memory_space<vmem>>, vector<16x1024xf32>,
    %c1_i32 = arith.constant 1 : i32
    %9 = arith.cmpi eq, %arg0, %c1_i32 : i32
    %10 = arith.extui %9 : i1 to i32
    %c0_i32_8 = arith.constant 0 : i32
    %11 = arith.cmpi ne, %10, %c0_i32_8 : i32
    scf.if %11 {
      %c0_9 = arith.constant 0 : index
      %c0_10 = arith.constant 0 : index
      %12 = vector.load %arg7[%c0_9, %c0_10] : memref<16x1024xf32, #tpu.memory_space<vmem>>, vector<16x1024xf32>
      %c0_11 = arith.constant 0 : index
      %c0_12 = arith.constant 0 : index
      %13 = vector.load %arg3[%c0_11, %c0_12] : memref<1x1024xf32, #tpu.memory_space<vmem>>, vector<1x1024xf32>
      %14 = vector.broadcast %13 : vector<1x1024xf32> to vector<16x1024xf32>
      %15 = arith.addf %12, %14 : vector<16x1024xf32>
      %cst_13 = arith.constant 0.000000e+00 : f32
      %16 = vector.broadcast %cst_13 : f32 to vector<16x1024xf32>
      %17 = arith.maximumf %15, %16 : vector<16x1024xf32>
      %c0_14 = arith.constant 0 : index
      %c0_15 = arith.constant 0 : index
      %18 = vector.load %arg4[%c0_14, %c0_15] : memref<1x1024xf32, #tpu.memory_space<vmem>>, vector<1x1024xf32>
      %19 = vector.broadcast %18 : vector<1x1024xf32> to vector<16x1024xf32>
      %20 = arith.mulf %17, %19 : vector<16x1024xf32>
      %cst_16 = arith.constant dense<0.000000e+00> : vector<16xf32>
      %21 = vector.multi_reduction <add>, %20, %cst_16 [1] : vector<16x1024xf32> to vector<16xf32>
      %22 = vector.shape_cast %21 : vector<16xf32> to vector<16x1xf32>
      %c0_17 = arith.constant 0 : index
      %c0_18 = arith.constant 0 : index
      %23 = memref.load %arg5[%c0_17, %c0_18] : memref<1x1xf32, #tpu.memory_space<smem>>
      %24 = vector.broadcast %23 : f32 to vector<16x1xf32>
      %25 = arith.addf %22, %24 : vector<16x1xf32>
      %cst_19 = arith.constant 0.000000e+00 : f32
      %26 = vector.broadcast %cst_19 : f32 to vector<16x1xf32>
      %27 = arith.subf %26, %25 : vector<16x1xf32>
      %28 = math.exp %27 : vector<16x1xf32>
      %cst_20 = arith.constant 1.000000e+00 : f32
      %29 = vector.broadcast %cst_20 : f32 to vector<16x1xf32>
      %30 = arith.addf %29, %28 : vector<16x1xf32>
      %cst_21 = arith.constant 1.000000e+00 : f32
      %31 = vector.broadcast %cst_21 : f32 to vector<16x1xf32>
      %32 = arith.divf %31, %30 : vector<16x1xf32>
      %c0_22 = arith.constant 0 : index
      %c0_23 = arith.constant 0 : index
      %33 = vector.load %arg6[%c0_22, %c0_23] : memref<16x1xf32, #tpu.memory_space<vmem>>, vector<16x1xf32>
      tpu.vector_store %arg6[%c0_22, %c0_23], %32 {strides = array<i32>} : memref<16x1xf32, #tpu.memory_space<vmem>>, vector<16x1xf32>,
    } else {
    }
    return
  }
  func.func @transform_0(%arg0: i32) -> (i32, i32) {
    %c0_i32 = arith.constant 0 : i32
    %c0_i32_0 = arith.constant 0 : i32
    return %c0_i32, %arg0 : i32, i32
  }
  func.func @transform_1(%arg0: i32) -> (i32, i32) {
    %c0_i32 = arith.constant 0 : i32
    %c0_i32_0 = arith.constant 0 : i32
    return %arg0, %c0_i32 : i32, i32
  }
  func.func @transform_2(%arg0: i32) -> (i32, i32) {
    %c0_i32 = arith.constant 0 : i32
    %c0_i32_0 = arith.constant 0 : i32
    %c0_i32_1 = arith.constant 0 : i32
    return %c0_i32, %c0_i32_0 : i32, i32
  }
  func.func @transform_3(%arg0: i32) -> (i32, i32) {
    %c0_i32 = arith.constant 0 : i32
    %c0_i32_0 = arith.constant 0 : i32
    %c0_i32_1 = arith.constant 0 : i32
    return %c0_i32, %c0_i32_0 : i32, i32
  }
  func.func @transform_4(%arg0: i32) -> (i32, i32) {
    %c0_i32 = arith.constant 0 : i32
    %c0_i32_0 = arith.constant 0 : i32
    %c0_i32_1 = arith.constant 0 : i32
    return %c0_i32, %c0_i32_0 : i32, i32
  }
  func.func @transform_5(%arg0: i32) -> (i32, i32) {
    %c0_i32 = arith.constant 0 : i32
    %c0_i32_0 = arith.constant 0 : i32
    %c0_i32_1 = arith.constant 0 : i32
    return %c0_i32, %c0_i32_0 : i32, i32
  }
}

</mosaic_0001>

<bundles_post_ra>
// kernel: tpu_custom_call.1
= control target key start
LH: loop header
LB: loop body
LE: loop exit
PB: predicated region body
PF: predicated region fallthrough
CT: control target
= control target key end

     0   :  { %s3615_s0 = inlined_call_operand.hbm [shape: bf16[16,1024], index: 0, kind: input, shape index: {}]   ;;  %s3616_s1 = inlined_call_operand.hbm [shape: bf16[1024,1024], index: 1, kind: input, shape index: {}]   ;;  %s3617_s2 = inlined_call_operand.hbm [shape: f32[1,1024], index: 2, kind: input, shape index: {}]   ;;  %s3618_s3 = inlined_call_operand.hbm [shape: f32[1,1024], index: 3, kind: input, shape index: {}]   ;;  %s3619_s4 = inlined_call_operand.<no memory space> [shape: f32[1,1], index: 4, kind: input, shape index: {}]   ;;  %s3620_s5 = inlined_call_operand.vmem [shape: f32[16,1], index: 5, kind: output, shape index: {}]  }
   0x1   :  { %10 = sst [smem:[#allocation3]] %s3619_s4 }
   0x2   :  { %11 = vsyncpa [#allocation5], 0 }
   0x3   :  { %13 = vsyncpa [#allocation5 + $0x1], 0 }
   0x4   :  { %14 = vsyncpa [#allocation7], 0 }
   0x5   :  { %16 = vsyncpa [#allocation7 + $0x1], 0 }
   0x6   :  { %17 = vsyncpa [#allocation10], 0  ;;  %s3111_s20 = smov 0   ;;  %s3113_s21 = smov 0  }
   0x7   :  { %s3115_s22 = smov 0   ;;  %s3117_s23 = smov 0  }
   0x8 LB: > { %s3130_s4 = sadd.s32 4294967295, %s3067_s23   ;;  %s3133_s24 = sadd.s32 1, %s3067_s23   ;;  %s3067_s23 = sphi %s3117_s23, %s3641_s23   ;;  %s3063_s22 = sphi %s3115_s22, %s3640_s22   ;;  %s3059_s21 = sphi %s3113_s21, %s3639_s21   ;;  %s3055_s20 = sphi %s3111_s20, %s3638_s20  }
   0x9   : > { %s27_s25 = ssub.s32 %s3067_s23, %s3133_s24  ;;  %s30_s26 = sadd.s32 1, %s3063_s22 }
   0xa   : > { %p28_p0 = scmp.eq.s32.totalorder %s27_s25, 0  ;;  %p37_p1 = scmp.ne.s32.totalorder %s3063_s22, %s3059_s21 }
   0xb   : > { %p38_p2 = scmp.eq.s32.totalorder %s3067_s23, 0  ;;  %p43_p3 = scmp.ne.s32.totalorder %s3059_s21, %s3055_s20 }
   0xc   : > { %s3143_s27 = scalar_select %p28_p0, %s3063_s22, %s30_s26  }
   0xd   : > { %p3145_p4 = por %p38_p2, %p37_p1  ;;  %p3621_p5 = scmp.eq.s32.totalorder %s3130_s4, 0 }
   0xe   : > { %p2542_p6 = scmp.ge.s32.totalorder %s3067_s23, 1  ;;  %p164_p7 = scmp.lt.s32.totalorder %s3067_s23, 3 }
   0xf   : > { %p3154_p8 = por %p3621_p5, %p43_p3  ;;  %s3069_s6 = smov [#allocation8]  }
  0x10   : > { %p3159_p10 = pnand %p2542_p6, %p164_p7  ;;  %s177_s7 = sshll.u32 %s3069_s6, 4  ;;  %s178_s7 = int_to_ptr.vmem [resolvable:$true] %s177_s7 }
  0x11   : > { %s3626_s29 = scalar_select %p3154_p8, 1, 0 }
  0x12   : > { %s3627_s30 = scalar_select %p3159_p10, 1, 0 }
  0x13   : > { %p2837_p11 = pneg %p3159_p10  ;;  %p2853_p12 = scmp.lt.s32.totalorder %s3067_s23, 2 }
  0x14   : > { %s3070_s9 = smov [#allocation9]   ;;  %s3179_s12 = sand.u32 1, %s3063_s22  }
  0x15   : > { %p3168_p13 = pnand %p2837_p11, %p3621_p5  ;;  %s188_s10 = sshll.u32 %s3070_s9, 4  ;;  %s189_s10 = int_to_ptr.vmem [resolvable:$true] %s188_s10 }
  0x16   : > { %p3174_p0 = pnand %p2853_p12, %p3145_p4  ;;  %s2924_s13 = scalar_lea.vmem %s178_s7, 128 }
  0x17   : > { %p2915_p1 = pneg %p3168_p13  ;;  %p2925_p2 = scmp.ne.s32.totalorder %s178_s7, %s2924_s13 }
  0x18   : > { %s3629_s11 = scalar_select %p3174_p0, 1, 0 }
  0x19   : > { %p2927_p3 = pnand %p2925_p2, %p2915_p1  ;;  %p2932_p7 = scmp.lt.s32.totalorder %s178_s7, %s178_s7 }
  0x1a   : > { %p2933_p11 = scmp.lt.s32.totalorder %s2924_s13, %s2924_s13 }
  0x1b   : > { %p2928_p6 = pneg %p2927_p3 }
  0x1c   : > { %p2934_p9 = por %p2933_p11, %p2932_p7 }
  0x1e   : > { %p2935_p5 = pnand %p2934_p9, %p2928_p6 }
  0x20   : > { %2938 = shalt.err (!%p2935_p5)
}
  0x21   : > { %2840 = dma.hbm_to_vmem [thread:$0]  (!%p3168_p13), %s3617_s2, 128, %s178_s7, [#allocation7]  }
  0x22   : > { %s2950_s16 = scalar_lea.vmem %s189_s10, 128  ;;  %p2958_p2 = scmp.lt.s32.totalorder %s189_s10, %s189_s10 }
  0x23   : > { %p2951_p4 = scmp.ne.s32.totalorder %s189_s10, %s2950_s16  ;;  %p2959_p3 = scmp.lt.s32.totalorder %s2950_s16, %s2950_s16 }
  0x25   : > { %p2953_p12 = pnand %p2951_p4, %p2915_p1  ;;  %p2960_p10 = por %p2959_p3, %p2958_p2 }
  0x27   : > { %p2954_p8 = pneg %p2953_p12 }
  0x29   : > { %p2961_p0 = pnand %p2960_p10, %p2954_p8 }
  0x2b   : > { %2964 = shalt.err (!%p2961_p0)
}
  0x2c   : > { %2843 = dma.hbm_to_vmem [thread:$0]  (!%p3168_p13), %s3618_s3, 128, %s189_s10, [#allocation10]  }
  0x2d   : > { %s2546_s19 = sshll.u32 %s3179_s12, 5  ;;  %s2822_s20 = sshll.u32 %s3067_s23, 8 }
  0x2e   : > { %s3204_s28 = scalar_lea.hbm %s3615_s0, %s2822_s20  ;;  %s206_s6 = scalar_lea.vmem [#allocation4], %s2546_s19 }
  0x2f   : > { %s213_s7 = sshll.u32 %s206_s6, 4  ;;  %s223_s8 = sand.u32 1, %s3067_s23   ;;  %s3206_s7 = int_to_ptr.vmem [resolvable:$true] %s213_s7 }
  0x30   : > { %s203_s9 = scalar_lea.sflag [#allocation5], %s3179_s12  ;;  %s2965_s13 = scalar_lea.hbm %s3204_s28, 512 }
  0x31   : > { %p2966_p5 = scmp.ne.s32.totalorder %s3204_s28, %s2965_s13  ;;  %p3630_p8 = scmp.ne.s32.totalorder %s3629_s11, 0 }
  0x32   : > { %s2970_s15 = scalar_lea.hbm %s3615_s0, 1024  ;;  %p2971_p0 = scmp.lt.s32.totalorder %s3204_s28, %s3615_s0 }
  0x33   : > { %p2967_p9 = pneg %p3630_p8  ;;  %p2972_p1 = scmp.lt.s32.totalorder %s2970_s15, %s2965_s13 }
  0x35   : > { %p2968_p10 = pnand %p2967_p9, %p2966_p5  ;;  %p2973_p6 = por %p2972_p1, %p2971_p0 }
  0x37   : > { %p2969_p13 = pneg %p2968_p10 }
  0x39   : > { %p2974_p7 = pnand %p2973_p6, %p2969_p13 }
  0x3b   : > { %2977 = shalt.err (!%p2974_p7)
}
  0x3c   : > { %s2978_s18 = scalar_lea.vmem %s3206_s7, 512  ;;  %s3071_s19 = smov [#allocation4]  }
  0x3d   : > { %p2979_p11 = scmp.ne.s32.totalorder %s3206_s7, %s2978_s18  ;;  %s2983_s20 = sshll.u32 %s3071_s19, 4  ;;  %s2984_s20 = int_to_ptr.vmem [resolvable:$false] %s2983_s20 }
  0x3e   : > { %s2985_s25 = scalar_lea.vmem %s2984_s20, 1024  ;;  %p2986_p2 = scmp.lt.s32.totalorder %s3206_s7, %s2984_s20 }
  0x3f   : > { %p2981_p4 = pnand %p2979_p11, %p2967_p9  ;;  %p2987_p3 = scmp.lt.s32.totalorder %s2985_s25, %s2978_s18 }
  0x41   : > { %p2982_p12 = pneg %p2981_p4  ;;  %p2988_p5 = por %p2987_p3, %p2986_p2 }
  0x43   : > { %p2989_p10 = pnand %p2988_p5, %p2982_p12 }
  0x45   : > { %2992 = shalt.err (!%p2989_p10)
}
  0x46   : > { %s3072_s26 = smov 512   ;;  %s3073_s6 = smov 256  }
  0x47   : > { %s3074_s13 = smov 16   ;;  %s2549_s10 = sshll.u32 %s3179_s12, 11 }
  0x48   : > { %2847 = dma.hbm_to_vmem [thread:$0]  (!%p3630_p8), %s3204_s28, 512, %s3206_s7, %s203_s9, %s3072_s26, %s3073_s6, %s3074_s13  }
  0x49   : > { %s2824_s14 = sshll.u32 %s3067_s23, 15  ;;  %s227_s18 = scalar_lea.vmem [#allocation6], %s2549_s10 }
  0x4a   : > { %s3242_s17 = scalar_lea.hbm %s3616_s1, %s2824_s14  ;;  %s235_s19 = sshll.u32 %s227_s18, 4  ;;  %s3244_s19 = int_to_ptr.vmem [resolvable:$true] %s235_s19 }
  0x4b   : > { %s3248_s20 = scalar_lea.sflag [#allocation7], %s223_s8  ;;  %s2993_s25 = scalar_lea.hbm %s3242_s17, 32768 }
  0x4c   : > { %p2994_p13 = scmp.ne.s32.totalorder %s3242_s17, %s2993_s25  ;;  %s2998_s7 = scalar_lea.hbm %s3616_s1, 65536 }
  0x4d   : > { %p2999_p6 = scmp.lt.s32.totalorder %s3242_s17, %s3616_s1  ;;  %p3000_p7 = scmp.lt.s32.totalorder %s2998_s7, %s2993_s25 }
  0x4e   : > { %p2996_p0 = pnand %p2994_p13, %p2967_p9 }
  0x4f   : > { %p3001_p11 = por %p3000_p7, %p2999_p6 }
  0x50   : > { %p2997_p1 = pneg %p2996_p0 }
  0x52   : > { %p3002_p4 = pnand %p3001_p11, %p2997_p1 }
  0x54   : > { %3005 = shalt.err (!%p3002_p4)
}
  0x55   : > { %s3006_s23 = scalar_lea.vmem %s3244_s19, 32768  ;;  %s3075_s8 = smov [#allocation6]  }
  0x56   : > { %p3007_p12 = scmp.ne.s32.totalorder %s3244_s19, %s3006_s23  ;;  %s3011_s13 = sshll.u32 %s3075_s8, 4  ;;  %s3012_s13 = int_to_ptr.vmem [resolvable:$false] %s3011_s13 }
  0x57   : > { %s3013_s10 = scalar_lea.vmem %s3012_s13, 65536  ;;  %p3014_p5 = scmp.lt.s32.totalorder %s3244_s19, %s3012_s13 }
  0x58   : > { %p3009_p2 = pnand %p3007_p12, %p2967_p9  ;;  %p3015_p10 = scmp.lt.s32.totalorder %s3013_s10, %s3006_s23 }
  0x5a   : > { %p3010_p3 = pneg %p3009_p2  ;;  %p3016_p13 = por %p3015_p10, %p3014_p5 }
  0x5c   : > { %p3017_p0 = pnand %p3016_p13, %p3010_p3 }
  0x5e   : > { %3020 = shalt.err (!%p3017_p0)
}
  0x5f   : > { %s3076_s14 = smov 32   ;;  %p3631_p9 = scmp.ne.s32.totalorder %s3627_s30, 0 }
  0x60   : > { %2850 = dma.hbm_to_vmem [thread:$0]  (!%p3630_p8), %s3242_s17, 32768, %s3244_s19, %s3248_s20, %s3072_s26, %s3072_s26, %s3076_s14  }
  0x61   : > { %247 = sbr.rel (%p3631_p9) target bundleno = 806 (0x326), region = 40  ;;  %s249_s15 = sand.u32 (!%p3631_p9), 1, %s3059_s21  }
  0x62   : > { %s2554_s16 = sshll.u32 (!%p3631_p9), %s249_s15, 5  ;;  %s250_s18 = scalar_lea.sflag (!%p3631_p9), [#allocation5], %s249_s15 }
  0x63   : > { %s3278_s25 = scalar_lea.vmem (!%p3631_p9), [#allocation4], %s2554_s16  ;;  %p3632_p1 = scmp.ne.s32.totalorder (!%p3631_p9), %s3626_s29, 0 }
  0x66   : > { %3038 = dma.done.wait (%p3632_p1), %s250_s18, 512  }
  0x67   : > { %3040 = vsyncadd (%p3632_p1), %s250_s18, 4294966784  ;;  %s258_s11 = sand.u32 1, %s3130_s4   ;;  %s2555_s12 = sshll.u32 %s249_s15, 11 }
  0x68   : > { %s259_s26 = scalar_lea.sflag [#allocation7], %s258_s11  ;;  %s3285_s17 = scalar_lea.vmem [#allocation6], %s2555_s12 }
  0x69   : > { %3042 = dma.done.wait (%p3632_p1), %s259_s26, 32768  }
  0x6a   : > { %3044 = vsyncadd (%p3632_p1), %s259_s26, 4294934528  ;;  %p3633_p8 = scmp.eq.s32.totalorder %s3130_s4, 0 }
  0x6c   : > { %3046 = dma.done.wait (%p3633_p8), [#allocation7], 128   ;;  %p3634_p6 = pmov %p3633_p8 }
  0x6e   : > { %3048 = vsyncadd (%p3634_p6), [#allocation7], 4294967168  ;;  %p3635_p7 = pmov %p3634_p6 }
  0x6f   : > { %p3636_p11 = pmov %p3634_p6 }
  0x70   : > { %3050 = dma.done.wait (%p3635_p7), [#allocation10], 128  }
  0x71   : > { %3052 = vsyncadd (%p3636_p11), [#allocation10], 4294967168  ;;  %p3637_p4 = scmp.ne.s32.totalorder %s3130_s4, 0 }
  0x73   : > { %302 = sbr.rel (%p3637_p4) target bundleno = 129 (0x81), region = 60 }
  0x78   : > { %v3077_v0 = vmov 0.0  }
  0x79   : > { %303 = vst [vmem:[#allocation2 + $0x30] sm:$0xff] %v3077_v0  ;;  %304 = vst [vmem:[#allocation2] sm:$0xff] %v3077_v0 }
  0x7a   : > { %305 = vst [vmem:[#allocation2 + $0x58] sm:$0xff] %v3077_v0  ;;  %306 = vst [vmem:[#allocation2 + $0x18] sm:$0xff] %v3077_v0 }
  0x7b   : > { %307 = vst [vmem:[#allocation2 + $0x50] sm:$0xff] %v3077_v0  ;;  %308 = vst [vmem:[#allocation2 + $0x68] sm:$0xff] %v3077_v0 }
  0x7c   : > { %309 = vst [vmem:[#allocation2 + $0x8] sm:$0xff] %v3077_v0  ;;  %310 = vst [vmem:[#allocation2 + $0x48] sm:$0xff] %v3077_v0 }
  0x7d   : > { %311 = vst [vmem:[#allocation2 + $0x40] sm:$0xff] %v3077_v0  ;;  %312 = vst [vmem:[#allocation2 + $0x20] sm:$0xff] %v3077_v0 }
  0x7e   : > { %313 = vst [vmem:[#allocation2 + $0x10] sm:$0xff] %v3077_v0  ;;  %314 = vst [vmem:[#allocation2 + $0x38] sm:$0xff] %v3077_v0 }
  0x7f   : > { %315 = vst [vmem:[#allocation2 + $0x60] sm:$0xff] %v3077_v0  ;;  %316 = vst [vmem:[#allocation2 + $0x70] sm:$0xff] %v3077_v0 }
  0x80   : > { %317 = vst [vmem:[#allocation2 + $0x78] sm:$0xff] %v3077_v0  ;;  %318 = vst [vmem:[#allocation2 + $0x28] sm:$0xff] %v3077_v0 }
  0x81 PF: > { %v395_v1 = vld [vmem:[%s3285_s17 + $0x1c0] sm:$0xff]  ;;  %v3337_v60 = vld [vmem:[%s3278_s25 + $0xc] ss:$16 sps:$4 sm:$0xff]   ;;  %p2819_p12 = scmp.ne.s32.totalorder %s3130_s4, 1 }
  0x82   : > { %v399_v2 = vld [vmem:[%s3285_s17 + $0x1e0] sm:$0xff]  ;;  %1970 = vmatprep.mubr.bf16.mxu1 %v3337_v60  ;;  %s2441_s4 = sld [smem:[#allocation3]] (!%p2819_p12) }
  0x83   : > { %v523_v3 = vld [vmem:[%s3285_s17 + $0x5c0] sm:$0xff]  ;;  %v2620_v4 = vcombine.high %v395_v1, %v399_v2  ;;  %v2619_v6 = vcombine.low %v395_v1, %v399_v2 }
  0x84   : > { %v527_v5 = vld [vmem:[%s3285_s17 + $0x5e0] sm:$0xff] }
  0x85   : > { %v387_v7 = vld [vmem:[%s3285_s17 + $0x180] sm:$0xff]  ;;  %v2748_v9 = vcombine.high %v523_v3, %v527_v5  ;;  %v2747_v10 = vcombine.low %v523_v3, %v527_v5  ;;  %1895 = vmatprep.subr.bf16.mxu0 %v2620_v4 }
  0x86   : > { %v391_v8 = vld [vmem:[%s3285_s17 + $0x1a0] sm:$0xff]  ;;  %1896 = vmatpush1.bf16.msra.mxu0 %v2619_v6 }
  0x87   : > { %v2612_v11 = vcombine.high %v387_v7, %v391_v8  ;;  %v515_v12 = vld [vmem:[%s3285_s17 + $0x580] sm:$0xff]  ;;  %1938 = vmatprep.subr.bf16.mxu1 %v2748_v9  ;;  %v2611_v19 = vcombine.low %v387_v7, %v391_v8 }
  0x88   : > { %v519_v13 = vld [vmem:[%s3285_s17 + $0x5a0] sm:$0xff]  ;;  %1939 = vmatpush1.bf16.msra.mxu1 %v2747_v10 }
  0x89   : > { %v379_v14 = vld [vmem:[%s3285_s17 + $0x140] sm:$0xff]  ;;  %v2740_v15 = vcombine.high %v515_v12, %v519_v13  ;;  %1897 = vmatprep.subr.bf16.mxu0 %v2612_v11  ;;  %v2739_v20 = vcombine.low %v515_v12, %v519_v13 }
  0x8a   : > { %v383_v16 = vld [vmem:[%s3285_s17 + $0x160] sm:$0xff]  ;;  %1898 = vmatpush1.bf16.msra.mxu0 %v2611_v19 }
  0x8b   : > { %v507_v17 = vld [vmem:[%s3285_s17 + $0x540] sm:$0xff]  ;;  %v2604_v21 = vcombine.high %v379_v14, %v383_v16  ;;  %1940 = vmatprep.subr.bf16.mxu1 %v2740_v15  ;;  %v2603_v27 = vcombine.low %v379_v14, %v383_v16 }
  0x8c   : > { %v511_v18 = vld [vmem:[%s3285_s17 + $0x560] sm:$0xff]  ;;  %1941 = vmatpush1.bf16.msra.mxu1 %v2739_v20 }
  0x8d   : > { %v2732_v22 = vcombine.high %v507_v17, %v511_v18  ;;  %v371_v23 = vld [vmem:[%s3285_s17 + $0x100] sm:$0xff]  ;;  %1899 = vmatprep.subr.bf16.mxu0 %v2604_v21  ;;  %v2731_v28 = vcombine.low %v507_v17, %v511_v18 }
  0x8e   : > { %v375_v24 = vld [vmem:[%s3285_s17 + $0x120] sm:$0xff]  ;;  %1900 = vmatpush1.bf16.msra.mxu0 %v2603_v27 }
  0x8f   : > { %v499_v25 = vld [vmem:[%s3285_s17 + $0x500] sm:$0xff]  ;;  %v2596_v29 = vcombine.high %v371_v23, %v375_v24  ;;  %1942 = vmatprep.subr.bf16.mxu1 %v2732_v22  ;;  %v2595_v35 = vcombine.low %v371_v23, %v375_v24 }
  0x90   : > { %v503_v26 = vld [vmem:[%s3285_s17 + $0x520] sm:$0xff]  ;;  %1943 = vmatpush1.bf16.msra.mxu1 %v2731_v28 }
  0x91   : > { %v2724_v30 = vcombine.high %v499_v25, %v503_v26  ;;  %v363_v31 = vld [vmem:[%s3285_s17 + $0xc0] sm:$0xff]  ;;  %1901 = vmatprep.subr.bf16.mxu0 %v2596_v29  ;;  %v2723_v36 = vcombine.low %v499_v25, %v503_v26 }
  0x92   : > { %v367_v32 = vld [vmem:[%s3285_s17 + $0xe0] sm:$0xff]  ;;  %1902 = vmatpush1.bf16.msra.mxu0 %v2595_v35 }
  0x93   : > { %v491_v33 = vld [vmem:[%s3285_s17 + $0x4c0] sm:$0xff]  ;;  %v2588_v37 = vcombine.high %v363_v31, %v367_v32  ;;  %1944 = vmatprep.subr.bf16.mxu1 %v2724_v30  ;;  %v2587_v43 = vcombine.low %v363_v31, %v367_v32 }
  0x94   : > { %v495_v34 = vld [vmem:[%s3285_s17 + $0x4e0] sm:$0xff]  ;;  %1945 = vmatpush1.bf16.msra.mxu1 %v2723_v36 }
  0x95   : > { %v2716_v38 = vcombine.high %v491_v33, %v495_v34  ;;  %v355_v39 = vld [vmem:[%s3285_s17 + $0x80] sm:$0xff]  ;;  %1903 = vmatprep.subr.bf16.mxu0 %v2588_v37  ;;  %v2715_v44 = vcombine.low %v491_v33, %v495_v34 }
  0x96   : > { %v359_v40 = vld [vmem:[%s3285_s17 + $0xa0] sm:$0xff]  ;;  %1904 = vmatpush1.bf16.msra.mxu0 %v2587_v43 }
  0x97   : > { %v483_v41 = vld [vmem:[%s3285_s17 + $0x480] sm:$0xff]  ;;  %v2580_v45 = vcombine.high %v355_v39, %v359_v40  ;;  %1946 = vmatprep.subr.bf16.mxu1 %v2716_v38  ;;  %v2579_v51 = vcombine.low %v355_v39, %v359_v40 }
  0x98   : > { %v487_v42 = vld [vmem:[%s3285_s17 + $0x4a0] sm:$0xff]  ;;  %1947 = vmatpush1.bf16.msra.mxu1 %v2715_v44 }
  0x99   : > { %v2708_v46 = vcombine.high %v483_v41, %v487_v42  ;;  %v347_v47 = vld [vmem:[%s3285_s17 + $0x40] sm:$0xff]  ;;  %1905 = vmatprep.subr.bf16.mxu0 %v2580_v45  ;;  %v2707_v53 = vcombine.low %v483_v41, %v487_v42 }
  0x9a   : > { %v351_v48 = vld [vmem:[%s3285_s17 + $0x60] sm:$0xff]  ;;  %1906 = vmatpush1.bf16.msra.mxu0 %v2579_v51 }
  0x9b   : > { %v475_v49 = vld [vmem:[%s3285_s17 + $0x440] sm:$0xff]  ;;  %v2572_v54 = vcombine.high %v347_v47, %v351_v48  ;;  %1948 = vmatprep.subr.bf16.mxu1 %v2708_v46  ;;  %v2571_v61 = vcombine.low %v347_v47, %v351_v48 }
  0x9c   : > { %v479_v50 = vld [vmem:[%s3285_s17 + $0x460] sm:$0xff]  ;;  %1949 = vmatpush1.bf16.msra.mxu1 %v2707_v53 }
  0x9d   : > { %v339_v52 = vld [vmem:[%s3285_s17] sm:$0xff]  ;;  %v2700_v56 = vcombine.high %v475_v49, %v479_v50  ;;  %1907 = vmatprep.subr.bf16.mxu0 %v2572_v54  ;;  %v2699_v62 = vcombine.low %v475_v49, %v479_v50 }
  0x9e   : > { %v343_v55 = vld [vmem:[%s3285_s17 + $0x20] sm:$0xff]  ;;  %1908 = vmatpush1.bf16.msra.mxu0 %v2571_v61 }
  0x9f   : > { %v3332_v57 = vld [vmem:[%s3278_s25 + $0x4] ss:$16 sps:$4 sm:$0xff]   ;;  %v2564_v63 = vcombine.high %v339_v52, %v343_v55  ;;  %1950 = vmatprep.subr.bf16.mxu1 %v2700_v56  ;;  %v2563_v5 = vcombine.low %v339_v52, %v343_v55 }
  0xa0   : > { %v467_v58 = vld [vmem:[%s3285_s17 + $0x400] sm:$0xff]  ;;  %1927 = vmatprep.mubr.bf16.mxu0 %v3332_v57  ;;  %1951 = vmatpush1.bf16.msra.mxu1 %v2699_v62 }
  0xa1   : > { %v471_v59 = vld [vmem:[%s3285_s17 + $0x420] sm:$0xff]  ;;  %1909 = vmatprep.subr.bf16.mxu0 %v2564_v63 }
  0xa2   : > { %v2692_v0 = vcombine.high %v467_v58, %v471_v59  ;;  %v459_v1 = vld [vmem:[%s3285_s17 + $0x3c0] sm:$0xff]  ;;  %v2691_v6 = vcombine.low %v467_v58, %v471_v59  ;;  %1910 = vmatpush1.bf16.msra.mxu0 %v2563_v5  ;;  %v524_v5 = vld [vmem:[%s3285_s17 + $0x5c8] sm:$0xff] }
  0xa3   : > { %v463_v2 = vld [vmem:[%s3285_s17 + $0x3e0] sm:$0xff] }
  0xa4   : > { %v587_v3 = vld [vmem:[%s3285_s17 + $0x7c0] sm:$0xff]  ;;  %v2684_v7 = vcombine.high %v459_v1, %v463_v2  ;;  %1952 = vmatprep.subr.bf16.mxu1 %v2692_v0  ;;  %v2683_v13 = vcombine.low %v459_v1, %v463_v2 }
  0xa5   : > { %v591_v4 = vld [vmem:[%s3285_s17 + $0x7e0] sm:$0xff]  ;;  %1953 = vmatpush1.bf16.msra.mxu1 %v2691_v6  ;;  %v528_v6 = vld [vmem:[%s3285_s17 + $0x5e8] sm:$0xff] }
  0xa6   : > { %v2812_v8 = vcombine.high %v587_v3, %v591_v4  ;;  %v451_v9 = vld [vmem:[%s3285_s17 + $0x380] sm:$0xff]  ;;  %1911 = vmatprep.subr.bf16.mxu0 %v2684_v7  ;;  %v2811_v14 = vcombine.low %v587_v3, %v591_v4  ;;  %v396_v3 = vld [vmem:[%s3285_s17 + $0x1c8] sm:$0xff] }
  0xa7   : > { %v455_v10 = vld [vmem:[%s3285_s17 + $0x3a0] sm:$0xff]  ;;  %1912 = vmatpush2.bf16.msra.mxu0 %v2683_v13  ;;  %v400_v4 = vld [vmem:[%s3285_s17 + $0x1e8] sm:$0xff] }
  0xa8   : > { %v579_v11 = vld [vmem:[%s3285_s17 + $0x780] sm:$0xff]  ;;  %v2676_v15 = vcombine.high %v451_v9, %v455_v10  ;;  %1954 = vmatprep.subr.bf16.mxu1 %v2812_v8  ;;  %v2675_v21 = vcombine.low %v451_v9, %v455_v10  ;;  %v2622_v9 = vcombine.high %v396_v3, %v400_v4  ;;  %v2750_v10 = vcombine.high %v524_v5, %v528_v6 }
  0xa9   : > { %v583_v12 = vld [vmem:[%s3285_s17 + $0x7a0] sm:$0xff]  ;;  %1955 = vmatpush2.bf16.msra.mxu1 %v2811_v14  ;;  %v516_v14 = vld [vmem:[%s3285_s17 + $0x588] sm:$0xff] }
  0xaa   : > { %v2804_v16 = vcombine.high %v579_v11, %v583_v12  ;;  %v443_v17 = vld [vmem:[%s3285_s17 + $0x340] sm:$0xff]  ;;  %1913 = vmatprep.subr.bf16.mxu0 %v2676_v15  ;;  %v2803_v22 = vcombine.low %v579_v11, %v583_v12  ;;  %v388_v11 = vld [vmem:[%s3285_s17 + $0x188] sm:$0xff] }
  0xab   : > { %v447_v18 = vld [vmem:[%s3285_s17 + $0x360] sm:$0xff]  ;;  %1914 = vmatpush2.bf16.msra.mxu0 %v2675_v21  ;;  %v392_v12 = vld [vmem:[%s3285_s17 + $0x1a8] sm:$0xff] }
  0xac   : > { %v571_v19 = vld [vmem:[%s3285_s17 + $0x740] sm:$0xff]  ;;  %v2668_v23 = vcombine.high %v443_v17, %v447_v18  ;;  %1956 = vmatprep.subr.bf16.mxu1 %v2804_v16  ;;  %v2667_v29 = vcombine.low %v443_v17, %v447_v18  ;;  %v520_v15 = vld [vmem:[%s3285_s17 + $0x5a8] sm:$0xff]  ;;  %v2621_v17 = vcombine.low %v396_v3, %v400_v4  ;;  %v2749_v18 = vcombine.low %v524_v5, %v528_v6 }
  0xad   : > { %v575_v20 = vld [vmem:[%s3285_s17 + $0x760] sm:$0xff]  ;;  %1957 = vmatpush2.bf16.msra.mxu1 %v2803_v22  ;;  %v3385_v16 = vld [vmem:[%s3278_s25 + $0x8] ss:$16 sps:$4 sm:$0xff]  }
  0xae   : > { %v2796_v24 = vcombine.high %v571_v19, %v575_v20  ;;  %v435_v25 = vld [vmem:[%s3285_s17 + $0x300] sm:$0xff]  ;;  %1915 = vmatprep.subr.bf16.mxu0 %v2668_v23  ;;  %v2795_v30 = vcombine.low %v571_v19, %v575_v20  ;;  %v2614_v19 = vcombine.high %v388_v11, %v392_v12  ;;  %v2742_v20 = vcombine.high %v516_v14, %v520_v15  ;;  %v380_v21 = vld [vmem:[%s3285_s17 + $0x148] sm:$0xff] }
  0xaf   : > { %v439_v26 = vld [vmem:[%s3285_s17 + $0x320] sm:$0xff]  ;;  %1916 = vmatpush2.bf16.msra.mxu0 %v2667_v29  ;;  %v384_v22 = vld [vmem:[%s3285_s17 + $0x168] sm:$0xff] }
  0xb0   : > { %v563_v27 = vld [vmem:[%s3285_s17 + $0x700] sm:$0xff]  ;;  %v2660_v31 = vcombine.high %v435_v25, %v439_v26  ;;  %1958 = vmatprep.subr.bf16.mxu1 %v2796_v24  ;;  %v2659_v37 = vcombine.low %v435_v25, %v439_v26  ;;  %v508_v23 = vld [vmem:[%s3285_s17 + $0x548] sm:$0xff]  ;;  %v2613_v25 = vcombine.low %v388_v11, %v392_v12  ;;  %v2741_v26 = vcombine.low %v516_v14, %v520_v15 }
  0xb1   : > { %v567_v28 = vld [vmem:[%s3285_s17 + $0x720] sm:$0xff]  ;;  %1959 = vmatpush2.bf16.msra.mxu1 %v2795_v30  ;;  %v512_v24 = vld [vmem:[%s3285_s17 + $0x568] sm:$0xff] }
  0xb2   : > { %v2788_v32 = vcombine.high %v563_v27, %v567_v28  ;;  %v427_v33 = vld [vmem:[%s3285_s17 + $0x2c0] sm:$0xff]  ;;  %1917 = vmatprep.subr.bf16.mxu0 %v2660_v31  ;;  %v2787_v38 = vcombine.low %v563_v27, %v567_v28  ;;  %v2606_v27 = vcombine.high %v380_v21, %v384_v22  ;;  %v2734_v28 = vcombine.high %v508_v23, %v512_v24  ;;  %v372_v29 = vld [vmem:[%s3285_s17 + $0x108] sm:$0xff] }
  0xb3   : > { %v431_v34 = vld [vmem:[%s3285_s17 + $0x2e0] sm:$0xff]  ;;  %1918 = vmatpush2.bf16.msra.mxu0 %v2659_v37  ;;  %v376_v30 = vld [vmem:[%s3285_s17 + $0x128] sm:$0xff] }
  0xb4   : > { %v555_v35 = vld [vmem:[%s3285_s17 + $0x6c0] sm:$0xff]  ;;  %v2652_v39 = vcombine.high %v427_v33, %v431_v34  ;;  %1960 = vmatprep.subr.bf16.mxu1 %v2788_v32  ;;  %v2651_v45 = vcombine.low %v427_v33, %v431_v34  ;;  %v500_v31 = vld [vmem:[%s3285_s17 + $0x508] sm:$0xff]  ;;  %v2605_v33 = vcombine.low %v380_v21, %v384_v22  ;;  %v2733_v34 = vcombine.low %v508_v23, %v512_v24 }
  0xb5   : > { %v559_v36 = vld [vmem:[%s3285_s17 + $0x6e0] sm:$0xff]  ;;  %1961 = vmatpush2.bf16.msra.mxu1 %v2787_v38  ;;  %v504_v32 = vld [vmem:[%s3285_s17 + $0x528] sm:$0xff] }
  0xb6   : > { %v2780_v40 = vcombine.high %v555_v35, %v559_v36  ;;  %v419_v41 = vld [vmem:[%s3285_s17 + $0x280] sm:$0xff]  ;;  %1919 = vmatprep.subr.bf16.mxu0 %v2652_v39  ;;  %v2779_v46 = vcombine.low %v555_v35, %v559_v36  ;;  %v2598_v35 = vcombine.high %v372_v29, %v376_v30  ;;  %v2726_v36 = vcombine.high %v500_v31, %v504_v32  ;;  %v364_v37 = vld [vmem:[%s3285_s17 + $0xc8] sm:$0xff] }
  0xb7   : > { %v423_v42 = vld [vmem:[%s3285_s17 + $0x2a0] sm:$0xff]  ;;  %1920 = vmatpush2.bf16.msra.mxu0 %v2651_v45  ;;  %v368_v38 = vld [vmem:[%s3285_s17 + $0xe8] sm:$0xff] }
  0xb8   : > { %v547_v43 = vld [vmem:[%s3285_s17 + $0x680] sm:$0xff]  ;;  %v2644_v47 = vcombine.high %v419_v41, %v423_v42  ;;  %1962 = vmatprep.subr.bf16.mxu1 %v2780_v40  ;;  %v2643_v53 = vcombine.low %v419_v41, %v423_v42  ;;  %v492_v39 = vld [vmem:[%s3285_s17 + $0x4c8] sm:$0xff]  ;;  %v2597_v41 = vcombine.low %v372_v29, %v376_v30  ;;  %v2725_v42 = vcombine.low %v500_v31, %v504_v32 }
  0xb9   : > { %v551_v44 = vld [vmem:[%s3285_s17 + $0x6a0] sm:$0xff]  ;;  %1963 = vmatpush2.bf16.msra.mxu1 %v2779_v46  ;;  %v496_v40 = vld [vmem:[%s3285_s17 + $0x4e8] sm:$0xff] }
  0xba   : > { %v2772_v48 = vcombine.high %v547_v43, %v551_v44  ;;  %v411_v49 = vld [vmem:[%s3285_s17 + $0x240] sm:$0xff]  ;;  %1921 = vmatprep.subr.bf16.mxu0 %v2644_v47  ;;  %v2771_v54 = vcombine.low %v547_v43, %v551_v44  ;;  %v2590_v43 = vcombine.high %v364_v37, %v368_v38  ;;  %v2718_v44 = vcombine.high %v492_v39, %v496_v40  ;;  %v356_v45 = vld [vmem:[%s3285_s17 + $0x88] sm:$0xff] }
  0xbb   : > { %v415_v50 = vld [vmem:[%s3285_s17 + $0x260] sm:$0xff]  ;;  %1922 = vmatpush2.bf16.msra.mxu0 %v2643_v53  ;;  %v360_v46 = vld [vmem:[%s3285_s17 + $0xa8] sm:$0xff] }
  0xbc   : > { %v539_v51 = vld [vmem:[%s3285_s17 + $0x640] sm:$0xff]  ;;  %v2636_v55 = vcombine.high %v411_v49, %v415_v50  ;;  %1964 = vmatprep.subr.bf16.mxu1 %v2772_v48  ;;  %v2635_v63 = vcombine.low %v411_v49, %v415_v50  ;;  %v484_v47 = vld [vmem:[%s3285_s17 + $0x488] sm:$0xff]  ;;  %v2589_v49 = vcombine.low %v364_v37, %v368_v38  ;;  %v2717_v50 = vcombine.low %v492_v39, %v496_v40 }
  0xbd   : > { %v543_v52 = vld [vmem:[%s3285_s17 + $0x660] sm:$0xff]  ;;  %1965 = vmatpush2.bf16.msra.mxu1 %v2771_v54  ;;  %v488_v48 = vld [vmem:[%s3285_s17 + $0x4a8] sm:$0xff] }
  0xbe   : > { %v2764_v56 = vcombine.high %v539_v51, %v543_v52  ;;  %v403_v58 = vld [vmem:[%s3285_s17 + $0x200] sm:$0xff]  ;;  %1923 = vmatprep.subr.bf16.mxu0 %v2636_v55  ;;  %v2763_v0 = vcombine.low %v539_v51, %v543_v52  ;;  %v2582_v51 = vcombine.high %v356_v45, %v360_v46  ;;  %v2710_v52 = vcombine.high %v484_v47, %v488_v48  ;;  %v348_v53 = vld [vmem:[%s3285_s17 + $0x48] sm:$0xff] }
  0xbf   : > { %v407_v59 = vld [vmem:[%s3285_s17 + $0x220] sm:$0xff]  ;;  %1924 = vmatpush2.bf16.msra.mxu0 %v2635_v63  ;;  %v352_v54 = vld [vmem:[%s3285_s17 + $0x68] sm:$0xff] }
  0xc0   : > { %v531_v61 = vld [vmem:[%s3285_s17 + $0x600] sm:$0xff]  ;;  %v2628_v1 = vcombine.high %v403_v58, %v407_v59  ;;  %1966 = vmatprep.subr.bf16.mxu1 %v2764_v56  ;;  %v2627_v7 = vcombine.low %v403_v58, %v407_v59  ;;  %v476_v55 = vld [vmem:[%s3285_s17 + $0x448] sm:$0xff]  ;;  %v2581_v58 = vcombine.low %v356_v45, %v360_v46  ;;  %v2709_v59 = vcombine.low %v484_v47, %v488_v48 }
  0xc1   : > { %v535_v62 = vld [vmem:[%s3285_s17 + $0x620] sm:$0xff]  ;;  %1967 = vmatpush2.bf16.msra.mxu1 %v2763_v0  ;;  %v480_v56 = vld [vmem:[%s3285_s17 + $0x468] sm:$0xff]  ;;  %v2573_v3 = vcombine.low %v348_v53, %v352_v54 }
  0xc2   : > { %v2756_v2 = vcombine.high %v531_v61, %v535_v62  ;;  %1925 = vmatprep.subr.bf16.mxu0 %v2628_v1  ;;  %v2755_v8 = vcombine.low %v531_v61, %v535_v62  ;;  %v3380_v13 = vld [vmem:[%s3278_s25] ss:$16 sps:$4 sm:$0xff]   ;;  %v2574_v61 = vcombine.high %v348_v53, %v352_v54  ;;  %v2702_v62 = vcombine.high %v476_v55, %v480_v56  ;;  %v340_v63 = vld [vmem:[%s3285_s17 + $0x8] sm:$0xff] }
  0xc3   : > { %1926 = vmatpush2.bf16.msra.mxu0 %v2627_v7  ;;  %v344_v0 = vld [vmem:[%s3285_s17 + $0x28] sm:$0xff]  ;;  %v2701_v4 = vcombine.low %v476_v55, %v480_v56 }
  0xc4   : > { %1968 = vmatprep.subr.bf16.mxu1 %v2756_v2  ;;  %1981 = vmatprep.subr.bf16.mxu0 %v2622_v9  ;;  %v468_v1 = vld [vmem:[%s3285_s17 + $0x408] sm:$0xff]  ;;  %v2566_v5 = vcombine.high %v340_v63, %v344_v0  ;;  %v2565_v11 = vcombine.low %v340_v63, %v344_v0 }
  0xc5   : > { %1969 = vmatpush2.bf16.msra.mxu1 %v2755_v8  ;;  %v472_v2 = vld [vmem:[%s3285_s17 + $0x428] sm:$0xff] }
  0xc6   : > { %2024 = vmatprep.subr.bf16.mxu1 %v2750_v10  ;;  %1928 = vmatmul.mubr.bf16.vlgmr.msra.gmra.mxu0 %v3380_v13  ;;  %v2694_v6 = vcombine.high %v468_v1, %v472_v2  ;;  %v460_v7 = vld [vmem:[%s3285_s17 + $0x3c8] sm:$0xff]  ;;  %v2693_v12 = vcombine.low %v468_v1, %v472_v2 }
  0xc7   : > { %1982 = vmatpush1.bf16.msra.mxu0 %v2621_v17  ;;  %2013 = vmatprep.mubr.bf16.mxu0 %v3332_v57  ;;  %v464_v8 = vld [vmem:[%s3285_s17 + $0x3e8] sm:$0xff] }
  0xc8   : > { %1971 = vmatmul.mubr.bf16.vlgmr.msra.gmra.mxu1 %v3385_v16  ;;  %1983 = vmatprep.subr.bf16.mxu0 %v2614_v19  ;;  %v588_v9 = vld [vmem:[%s3285_s17 + $0x7c8] sm:$0xff]  ;;  %v2686_v14 = vcombine.high %v460_v7, %v464_v8  ;;  %v2685_v21 = vcombine.low %v460_v7, %v464_v8 }
  0xc9   : > { %2025 = vmatpush1.bf16.msra.mxu1 %v2749_v18  ;;  %2056 = vmatprep.mubr.bf16.mxu1 %v3337_v60  ;;  %v592_v10 = vld [vmem:[%s3285_s17 + $0x7e8] sm:$0xff] }
  0xca   : > { %2026 = vmatprep.subr.bf16.mxu1 %v2742_v20  ;;  %v2814_v15 = vcombine.high %v588_v9, %v592_v10  ;;  %v452_v17 = vld [vmem:[%s3285_s17 + $0x388] sm:$0xff]  ;;  %v2813_v22 = vcombine.low %v588_v9, %v592_v10 }
  0xcb   : > { %1984 = vmatpush1.bf16.msra.mxu0 %v2613_v25  ;;  %v456_v18 = vld [vmem:[%s3285_s17 + $0x3a8] sm:$0xff] }
  0xcc   : > { %1985 = vmatprep.subr.bf16.mxu0 %v2606_v27  ;;  %v580_v19 = vld [vmem:[%s3285_s17 + $0x788] sm:$0xff]  ;;  %v2678_v23 = vcombine.high %v452_v17, %v456_v18  ;;  %v2677_v29 = vcombine.low %v452_v17, %v456_v18 }
  0xcd   : > { %2027 = vmatpush1.bf16.msra.mxu1 %v2741_v26  ;;  %v584_v20 = vld [vmem:[%s3285_s17 + $0x7a8] sm:$0xff] }
  0xce   : > { %2028 = vmatprep.subr.bf16.mxu1 %v2734_v28  ;;  %v2806_v24 = vcombine.high %v580_v19, %v584_v20  ;;  %v444_v25 = vld [vmem:[%s3285_s17 + $0x348] sm:$0xff]  ;;  %v2805_v30 = vcombine.low %v580_v19, %v584_v20 }
  0xcf   : > { %1986 = vmatpush1.bf16.msra.mxu0 %v2605_v33  ;;  %v448_v26 = vld [vmem:[%s3285_s17 + $0x368] sm:$0xff] }
  0xd0   : > { %1987 = vmatprep.subr.bf16.mxu0 %v2598_v35  ;;  %v572_v27 = vld [vmem:[%s3285_s17 + $0x748] sm:$0xff]  ;;  %v2670_v31 = vcombine.high %v444_v25, %v448_v26  ;;  %v2669_v37 = vcombine.low %v444_v25, %v448_v26 }
  0xd1   : > { %2029 = vmatpush1.bf16.msra.mxu1 %v2733_v34  ;;  %v576_v28 = vld [vmem:[%s3285_s17 + $0x768] sm:$0xff] }
  0xd2   : > { %2030 = vmatprep.subr.bf16.mxu1 %v2726_v36  ;;  %v2798_v32 = vcombine.high %v572_v27, %v576_v28  ;;  %v436_v33 = vld [vmem:[%s3285_s17 + $0x308] sm:$0xff]  ;;  %v2797_v38 = vcombine.low %v572_v27, %v576_v28 }
  0xd3   : > { %1988 = vmatpush1.bf16.msra.mxu0 %v2597_v41  ;;  %v440_v34 = vld [vmem:[%s3285_s17 + $0x328] sm:$0xff] }
  0xd4   : > { %1989 = vmatprep.subr.bf16.mxu0 %v2590_v43  ;;  %v564_v35 = vld [vmem:[%s3285_s17 + $0x708] sm:$0xff]  ;;  %v2662_v39 = vcombine.high %v436_v33, %v440_v34  ;;  %v2661_v45 = vcombine.low %v436_v33, %v440_v34 }
  0xd5   : > { %2031 = vmatpush1.bf16.msra.mxu1 %v2725_v42  ;;  %v568_v36 = vld [vmem:[%s3285_s17 + $0x728] sm:$0xff] }
  0xd6   : > { %2032 = vmatprep.subr.bf16.mxu1 %v2718_v44  ;;  %v2790_v40 = vcombine.high %v564_v35, %v568_v36  ;;  %v428_v41 = vld [vmem:[%s3285_s17 + $0x2c8] sm:$0xff]  ;;  %v2789_v46 = vcombine.low %v564_v35, %v568_v36 }
  0xd7   : > { %1990 = vmatpush1.bf16.msra.mxu0 %v2589_v49  ;;  %v432_v42 = vld [vmem:[%s3285_s17 + $0x2e8] sm:$0xff] }
  0xd8   : > { %1991 = vmatprep.subr.bf16.mxu0 %v2582_v51  ;;  %v556_v43 = vld [vmem:[%s3285_s17 + $0x6c8] sm:$0xff]  ;;  %v2654_v47 = vcombine.high %v428_v41, %v432_v42  ;;  %v2653_v53 = vcombine.low %v428_v41, %v432_v42 }
  0xd9   : > { %2033 = vmatpush1.bf16.msra.mxu1 %v2717_v50  ;;  %v560_v44 = vld [vmem:[%s3285_s17 + $0x6e8] sm:$0xff] }
  0xda   : > { %2034 = vmatprep.subr.bf16.mxu1 %v2710_v52  ;;  %v2782_v48 = vcombine.high %v556_v43, %v560_v44  ;;  %v420_v49 = vld [vmem:[%s3285_s17 + $0x288] sm:$0xff]  ;;  %v2781_v54 = vcombine.low %v556_v43, %v560_v44 }
  0xdb   : > { %1992 = vmatpush1.bf16.msra.mxu0 %v2581_v58  ;;  %v424_v50 = vld [vmem:[%s3285_s17 + $0x2a8] sm:$0xff] }
  0xdc   : > { %1993 = vmatprep.subr.bf16.mxu0 %v2574_v61  ;;  %v548_v51 = vld [vmem:[%s3285_s17 + $0x688] sm:$0xff]  ;;  %v2646_v55 = vcombine.high %v420_v49, %v424_v50  ;;  %v2645_v63 = vcombine.low %v420_v49, %v424_v50 }
  0xdd   : > { %2035 = vmatpush1.bf16.msra.mxu1 %v2709_v59  ;;  %v552_v52 = vld [vmem:[%s3285_s17 + $0x6a8] sm:$0xff] }
  0xde   : > { %2036 = vmatprep.subr.bf16.mxu1 %v2702_v62  ;;  %v2774_v56 = vcombine.high %v548_v51, %v552_v52  ;;  %v412_v58 = vld [vmem:[%s3285_s17 + $0x248] sm:$0xff]  ;;  %v2773_v0 = vcombine.low %v548_v51, %v552_v52  ;;  %v357_v51 = vld [vmem:[%s3285_s17 + $0x90] sm:$0xff] }
  0xdf   : > { %1994 = vmatpush1.bf16.msra.mxu0 %v2573_v3  ;;  %v416_v59 = vld [vmem:[%s3285_s17 + $0x268] sm:$0xff]  ;;  %v361_v52 = vld [vmem:[%s3285_s17 + $0xb0] sm:$0xff] }
  0xe0   : > { %1995 = vmatprep.subr.bf16.mxu0 %v2566_v5  ;;  %v540_v61 = vld [vmem:[%s3285_s17 + $0x648] sm:$0xff]  ;;  %v2638_v1 = vcombine.high %v412_v58, %v416_v59  ;;  %v2637_v7 = vcombine.low %v412_v58, %v416_v59  ;;  %v2584_v58 = vcombine.high %v357_v51, %v361_v52 }
  0xe1   : > { %2037 = vmatpush1.bf16.msra.mxu1 %v2701_v4  ;;  %v544_v62 = vld [vmem:[%s3285_s17 + $0x668] sm:$0xff] }
  0xe2   : > { %2038 = vmatprep.subr.bf16.mxu1 %v2694_v6  ;;  %v2766_v2 = vcombine.high %v540_v61, %v544_v62  ;;  %v404_v3 = vld [vmem:[%s3285_s17 + $0x208] sm:$0xff]  ;;  %v2765_v8 = vcombine.low %v540_v61, %v544_v62  ;;  %v349_v61 = vld [vmem:[%s3285_s17 + $0x50] sm:$0xff] }
  0xe3   : > { %1996 = vmatpush1.bf16.msra.mxu0 %v2565_v11  ;;  %v408_v4 = vld [vmem:[%s3285_s17 + $0x228] sm:$0xff]  ;;  %v397_v11 = vld [vmem:[%s3285_s17 + $0x1d0] sm:$0xff] }
  0xe4   : > { %1997 = vmatprep.subr.bf16.mxu0 %v2686_v14  ;;  %v532_v5 = vld [vmem:[%s3285_s17 + $0x608] sm:$0xff]  ;;  %v2630_v9 = vcombine.high %v404_v3, %v408_v4  ;;  %v525_v14 = vld [vmem:[%s3285_s17 + $0x5d0] sm:$0xff]  ;;  %v2629_v17 = vcombine.low %v404_v3, %v408_v4 }
  0xe5   : > { %2039 = vmatpush1.bf16.msra.mxu1 %v2693_v12  ;;  %v536_v6 = vld [vmem:[%s3285_s17 + $0x628] sm:$0xff]  ;;  %v401_v12 = vld [vmem:[%s3285_s17 + $0x1f0] sm:$0xff] }
  0xe6   : > { %2040 = vmatprep.subr.bf16.mxu1 %v2814_v15  ;;  %v2758_v10 = vcombine.high %v532_v5, %v536_v6  ;;  %v529_v15 = vld [vmem:[%s3285_s17 + $0x5f0] sm:$0xff]  ;;  %v2757_v18 = vcombine.low %v532_v5, %v536_v6  ;;  %v2624_v19 = vcombine.high %v397_v11, %v401_v12  ;;  %v2623_v25 = vcombine.low %v397_v11, %v401_v12 }
  0xe7   : > { %1998 = vmatpush2.bf16.msra.mxu0 %v2685_v21  ;;  %v2752_v20 = vcombine.high %v525_v14, %v529_v15  ;;  %v389_v21 = vld [vmem:[%s3285_s17 + $0x190] sm:$0xff]  ;;  %v2751_v26 = vcombine.low %v525_v14, %v529_v15 }
  0xe8   : > { %1999 = vmatprep.subr.bf16.mxu0 %v2678_v23  ;;  %v517_v23 = vld [vmem:[%s3285_s17 + $0x590] sm:$0xff] }
  0xe9   : > { %2041 = vmatpush2.bf16.msra.mxu1 %v2813_v22  ;;  %v393_v22 = vld [vmem:[%s3285_s17 + $0x1b0] sm:$0xff] }
  0xea   : > { %2042 = vmatprep.subr.bf16.mxu1 %v2806_v24  ;;  %v521_v24 = vld [vmem:[%s3285_s17 + $0x5b0] sm:$0xff]  ;;  %v2616_v27 = vcombine.high %v389_v21, %v393_v22  ;;  %v2615_v33 = vcombine.low %v389_v21, %v393_v22 }
  0xeb   : > { %2000 = vmatpush2.bf16.msra.mxu0 %v2677_v29  ;;  %v2744_v28 = vcombine.high %v517_v23, %v521_v24  ;;  %v381_v29 = vld [vmem:[%s3285_s17 + $0x150] sm:$0xff]  ;;  %v2743_v34 = vcombine.low %v517_v23, %v521_v24 }
  0xec   : > { %2001 = vmatprep.subr.bf16.mxu0 %v2670_v31  ;;  %v509_v31 = vld [vmem:[%s3285_s17 + $0x550] sm:$0xff] }
  0xed   : > { %2043 = vmatpush2.bf16.msra.mxu1 %v2805_v30  ;;  %v385_v30 = vld [vmem:[%s3285_s17 + $0x170] sm:$0xff] }
  0xee   : > { %2044 = vmatprep.subr.bf16.mxu1 %v2798_v32  ;;  %v513_v32 = vld [vmem:[%s3285_s17 + $0x570] sm:$0xff]  ;;  %v2608_v35 = vcombine.high %v381_v29, %v385_v30  ;;  %v2607_v41 = vcombine.low %v381_v29, %v385_v30 }
  0xef   : > { %2002 = vmatpush2.bf16.msra.mxu0 %v2669_v37  ;;  %v2736_v36 = vcombine.high %v509_v31, %v513_v32  ;;  %v373_v37 = vld [vmem:[%s3285_s17 + $0x110] sm:$0xff]  ;;  %v2735_v42 = vcombine.low %v509_v31, %v513_v32 }
  0xf0   : > { %2003 = vmatprep.subr.bf16.mxu0 %v2662_v39  ;;  %v501_v39 = vld [vmem:[%s3285_s17 + $0x510] sm:$0xff] }
  0xf1   : > { %2045 = vmatpush2.bf16.msra.mxu1 %v2797_v38  ;;  %v377_v38 = vld [vmem:[%s3285_s17 + $0x130] sm:$0xff] }
  0xf2   : > { %2046 = vmatprep.subr.bf16.mxu1 %v2790_v40  ;;  %v505_v40 = vld [vmem:[%s3285_s17 + $0x530] sm:$0xff]  ;;  %v2600_v43 = vcombine.high %v373_v37, %v377_v38 }
  0xf3   : > { %2004 = vmatpush2.bf16.msra.mxu0 %v2661_v45  ;;  %v2728_v44 = vcombine.high %v501_v39, %v505_v40  ;;  %v365_v45 = vld [vmem:[%s3285_s17 + $0xd0] sm:$0xff] }
  0xf4   : > { %2005 = vmatprep.subr.bf16.mxu0 %v2654_v47  ;;  %v493_v47 = vld [vmem:[%s3285_s17 + $0x4d0] sm:$0xff] }
  0xf5   : > { %2047 = vmatpush2.bf16.msra.mxu1 %v2789_v46  ;;  %v369_v46 = vld [vmem:[%s3285_s17 + $0xf0] sm:$0xff] }
  0xf6   : > { %2048 = vmatprep.subr.bf16.mxu1 %v2782_v48  ;;  %v2599_v48 = vcombine.low %v373_v37, %v377_v38  ;;  %v2592_v49 = vcombine.high %v365_v45, %v369_v46  ;;  %v353_v62 = vld [vmem:[%s3285_s17 + $0x70] sm:$0xff] }
  0xf7   : > { %2006 = vmatpush2.bf16.msra.mxu0 %v2653_v53  ;;  %v485_v53 = vld [vmem:[%s3285_s17 + $0x490] sm:$0xff]  ;;  %v2576_v3 = vcombine.high %v349_v61, %v353_v62 }
  0xf8   : > { %2007 = vmatprep.subr.bf16.mxu0 %v2646_v55  ;;  %v2591_v55 = vcombine.low %v365_v45, %v369_v46  ;;  %v341_v5 = vld [vmem:[%s3285_s17 + $0x10] sm:$0xff] }
  0xf9   : > { %2049 = vmatpush2.bf16.msra.mxu1 %v2781_v54  ;;  %v489_v54 = vld [vmem:[%s3285_s17 + $0x4b0] sm:$0xff] }
  0xfa   : > { %2050 = vmatprep.subr.bf16.mxu1 %v2774_v56  ;;  %v2712_v59 = vcombine.high %v485_v53, %v489_v54  ;;  %v345_v6 = vld [vmem:[%s3285_s17 + $0x30] sm:$0xff] }
  0xfb   : > { %2008 = vmatpush2.bf16.msra.mxu0 %v2645_v63  ;;  %v477_v63 = vld [vmem:[%s3285_s17 + $0x450] sm:$0xff]  ;;  %v2568_v11 = vcombine.high %v341_v5, %v345_v6 }
  0xfc   : > { %2009 = vmatprep.subr.bf16.mxu0 %v2638_v1  ;;  %v2583_v1 = vcombine.low %v357_v51, %v361_v52  ;;  %v461_v14 = vld [vmem:[%s3285_s17 + $0x3d0] sm:$0xff] }
  0xfd   : > { %2051 = vmatpush2.bf16.msra.mxu1 %v2773_v0  ;;  %v481_v0 = vld [vmem:[%s3285_s17 + $0x470] sm:$0xff] }
  0xfe   : > { %2052 = vmatprep.subr.bf16.mxu1 %v2766_v2  ;;  %v2711_v2 = vcombine.low %v485_v53, %v489_v54  ;;  %v2704_v4 = vcombine.high %v477_v63, %v481_v0  ;;  %v465_v15 = vld [vmem:[%s3285_s17 + $0x3f0] sm:$0xff] }
  0xff   : > { %2010 = vmatpush2.bf16.msra.mxu0 %v2637_v7  ;;  %v469_v7 = vld [vmem:[%s3285_s17 + $0x410] sm:$0xff]  ;;  %v2688_v21 = vcombine.high %v461_v14, %v465_v15 }
 0x100   : > { %2011 = vmatprep.subr.bf16.mxu0 %v2630_v9  ;;  %v2575_v9 = vcombine.low %v349_v61, %v353_v62  ;;  %v453_v23 = vld [vmem:[%s3285_s17 + $0x390] sm:$0xff] }
 0x101   : > { %2053 = vmatpush2.bf16.msra.mxu1 %v2765_v8  ;;  %v473_v8 = vld [vmem:[%s3285_s17 + $0x430] sm:$0xff] }
 0x102   : > { %2054 = vmatprep.subr.bf16.mxu1 %v2758_v10  ;;  %v2703_v10 = vcombine.low %v477_v63, %v481_v0  ;;  %v2696_v12 = vcombine.high %v469_v7, %v473_v8  ;;  %v457_v24 = vld [vmem:[%s3285_s17 + $0x3b0] sm:$0xff] }
 0x103   : > { %2012 = vmatpush2.bf16.msra.mxu0 %v2629_v17  ;;  %v589_v17 = vld [vmem:[%s3285_s17 + $0x7d0] sm:$0xff]  ;;  %v2680_v29 = vcombine.high %v453_v23, %v457_v24 }
 0x104   : > { %2067 = vmatprep.subr.bf16.mxu0 %v2624_v19  ;;  %v2567_v19 = vcombine.low %v341_v5, %v345_v6  ;;  %v445_v31 = vld [vmem:[%s3285_s17 + $0x350] sm:$0xff] }
 0x105   : > { %2055 = vmatpush2.bf16.msra.mxu1 %v2757_v18  ;;  %v593_v18 = vld [vmem:[%s3285_s17 + $0x7f0] sm:$0xff] }
 0x106   : > { %2110 = vmatprep.subr.bf16.mxu1 %v2752_v20  ;;  %2014 = vmatmul.mubr.bf16.vlgmr.msra.gmra.mxu0 %v3380_v13  ;;  %v2695_v20 = vcombine.low %v469_v7, %v473_v8  ;;  %v2816_v22 = vcombine.high %v589_v17, %v593_v18  ;;  %v449_v32 = vld [vmem:[%s3285_s17 + $0x370] sm:$0xff] }
 0x107   : > { %2068 = vmatpush1.bf16.msra.mxu0 %v2623_v25  ;;  %2099 = vmatprep.mubr.bf16.mxu0 %v3332_v57  ;;  %v497_v57 = vld [vmem:[%s3285_s17 + $0x4f0] sm:$0xff]  ;;  %v2672_v37 = vcombine.high %v445_v31, %v449_v32 }
 0x108   : > { %2057 = vmatmul.mubr.bf16.vlgmr.msra.gmra.mxu1 %v3385_v16  ;;  %2069 = vmatprep.subr.bf16.mxu0 %v2616_v27  ;;  %v2720_v50 = vcombine.high %v493_v47, %v497_v57  ;;  %v2719_v56 = vcombine.low %v493_v47, %v497_v57  ;;  %v581_v25 = vld [vmem:[%s3285_s17 + $0x790] sm:$0xff]  ;;  %v2687_v27 = vcombine.low %v461_v14, %v465_v15 }
 0x109   : > { %2111 = vmatpush1.bf16.msra.mxu1 %v2751_v26  ;;  %2142 = vmatprep.mubr.bf16.mxu1 %v3337_v60  ;;  %v2727_v60 = vcombine.low %v501_v39, %v505_v40  ;;  %v585_v26 = vld [vmem:[%s3285_s17 + $0x7b0] sm:$0xff] }
 0x10a   : > { %2112 = vmatprep.subr.bf16.mxu1 %v2744_v28  ;;  %v2815_v28 = vcombine.low %v589_v17, %v593_v18  ;;  %v2808_v30 = vcombine.high %v581_v25, %v585_v26  ;;  %v437_v39 = vld [vmem:[%s3285_s17 + $0x310] sm:$0xff]  ;;  %v398_v17 = vld [vmem:[%s3285_s17 + $0x1d8] sm:$0xff] }
 0x10b   : > { %2070 = vmatpush1.bf16.msra.mxu0 %v2615_v33  ;;  %v573_v33 = vld [vmem:[%s3285_s17 + $0x750] sm:$0xff]  ;;  %v402_v18 = vld [vmem:[%s3285_s17 + $0x1f8] sm:$0xff] }
 0x10c   : > { %2071 = vmatprep.subr.bf16.mxu0 %v2608_v35  ;;  %v2679_v35 = vcombine.low %v453_v23, %v457_v24  ;;  %v441_v40 = vld [vmem:[%s3285_s17 + $0x330] sm:$0xff]  ;;  %v2626_v23 = vcombine.high %v398_v17, %v402_v18 }
 0x10d   : > { %2113 = vmatpush1.bf16.msra.mxu1 %v2743_v34  ;;  %v577_v34 = vld [vmem:[%s3285_s17 + $0x770] sm:$0xff]  ;;  %v2664_v45 = vcombine.high %v437_v39, %v441_v40 }
 0x10e   : > { %2114 = vmatprep.subr.bf16.mxu1 %v2736_v36  ;;  %v2807_v36 = vcombine.low %v581_v25, %v585_v26  ;;  %v2800_v38 = vcombine.high %v573_v33, %v577_v34  ;;  %v429_v47 = vld [vmem:[%s3285_s17 + $0x2d0] sm:$0xff]  ;;  %v390_v25 = vld [vmem:[%s3285_s17 + $0x198] sm:$0xff] }
 0x10f   : > { %2072 = vmatpush1.bf16.msra.mxu0 %v2607_v41  ;;  %v565_v41 = vld [vmem:[%s3285_s17 + $0x710] sm:$0xff]  ;;  %v394_v26 = vld [vmem:[%s3285_s17 + $0x1b8] sm:$0xff] }
 0x110   : > { %2073 = vmatprep.subr.bf16.mxu0 %v2600_v43  ;;  %v2671_v43 = vcombine.low %v445_v31, %v449_v32  ;;  %v433_v57 = vld [vmem:[%s3285_s17 + $0x2f0] sm:$0xff]  ;;  %v2618_v31 = vcombine.high %v390_v25, %v394_v26 }
 0x111   : > { %2115 = vmatpush1.bf16.msra.mxu1 %v2735_v42  ;;  %v569_v42 = vld [vmem:[%s3285_s17 + $0x730] sm:$0xff]  ;;  %v2656_v51 = vcombine.high %v429_v47, %v433_v57 }
 0x112   : > { %2116 = vmatprep.subr.bf16.mxu1 %v2728_v44  ;;  %v2799_v44 = vcombine.low %v573_v33, %v577_v34  ;;  %v2792_v46 = vcombine.high %v565_v41, %v569_v42  ;;  %v421_v53 = vld [vmem:[%s3285_s17 + $0x290] sm:$0xff]  ;;  %v382_v33 = vld [vmem:[%s3285_s17 + $0x158] sm:$0xff] }
 0x113   : > { %2074 = vmatpush1.bf16.msra.mxu0 %v2599_v48  ;;  %v557_v48 = vld [vmem:[%s3285_s17 + $0x6d0] sm:$0xff]  ;;  %v386_v34 = vld [vmem:[%s3285_s17 + $0x178] sm:$0xff] }
 0x114   : > { %2075 = vmatprep.subr.bf16.mxu0 %v2592_v49  ;;  %v2663_v49 = vcombine.low %v437_v39, %v441_v40  ;;  %v425_v54 = vld [vmem:[%s3285_s17 + $0x2b0] sm:$0xff]  ;;  %v2610_v39 = vcombine.high %v382_v33, %v386_v34 }
 0x115   : > { %2117 = vmatpush1.bf16.msra.mxu1 %v2727_v60  ;;  %v561_v60 = vld [vmem:[%s3285_s17 + $0x6f0] sm:$0xff]  ;;  %v2648_v61 = vcombine.high %v421_v53, %v425_v54 }
 0x116   : > { %2118 = vmatprep.subr.bf16.mxu1 %v2720_v50  ;;  %v2791_v50 = vcombine.low %v565_v41, %v569_v42  ;;  %v2784_v52 = vcombine.high %v557_v48, %v561_v60  ;;  %v413_v63 = vld [vmem:[%s3285_s17 + $0x250] sm:$0xff]  ;;  %v374_v41 = vld [vmem:[%s3285_s17 + $0x118] sm:$0xff] }
 0x117   : > { %2076 = vmatpush1.bf16.msra.mxu0 %v2591_v55  ;;  %v549_v55 = vld [vmem:[%s3285_s17 + $0x690] sm:$0xff]  ;;  %v378_v42 = vld [vmem:[%s3285_s17 + $0x138] sm:$0xff] }
 0x118   : > { %2077 = vmatprep.subr.bf16.mxu0 %v2584_v58  ;;  %v2655_v58 = vcombine.low %v429_v47, %v433_v57  ;;  %v417_v0 = vld [vmem:[%s3285_s17 + $0x270] sm:$0xff]  ;;  %v2602_v47 = vcombine.high %v374_v41, %v378_v42 }
 0x119   : > { %2119 = vmatpush1.bf16.msra.mxu1 %v2719_v56  ;;  %v553_v56 = vld [vmem:[%s3285_s17 + $0x6b0] sm:$0xff]  ;;  %v2640_v5 = vcombine.high %v413_v63, %v417_v0 }
 0x11a   : > { %2120 = vmatprep.subr.bf16.mxu1 %v2712_v59  ;;  %v2783_v59 = vcombine.low %v557_v48, %v561_v60  ;;  %v2776_v62 = vcombine.high %v549_v55, %v553_v56  ;;  %v405_v7 = vld [vmem:[%s3285_s17 + $0x210] sm:$0xff]  ;;  %v366_v48 = vld [vmem:[%s3285_s17 + $0xd8] sm:$0xff] }
 0x11b   : > { %2078 = vmatpush1.bf16.msra.mxu0 %v2583_v1  ;;  %v541_v1 = vld [vmem:[%s3285_s17 + $0x650] sm:$0xff]  ;;  %v370_v60 = vld [vmem:[%s3285_s17 + $0xf8] sm:$0xff] }
 0x11c   : > { %2079 = vmatprep.subr.bf16.mxu0 %v2576_v3  ;;  %v2647_v3 = vcombine.low %v421_v53, %v425_v54  ;;  %v409_v8 = vld [vmem:[%s3285_s17 + $0x230] sm:$0xff]  ;;  %v2594_v53 = vcombine.high %v366_v48, %v370_v60 }
 0x11d   : > { %2121 = vmatpush1.bf16.msra.mxu1 %v2711_v2  ;;  %v545_v2 = vld [vmem:[%s3285_s17 + $0x670] sm:$0xff]  ;;  %v2632_v14 = vcombine.high %v405_v7, %v409_v8 }
 0x11e   : > { %2122 = vmatprep.subr.bf16.mxu1 %v2704_v4  ;;  %v2775_v4 = vcombine.low %v549_v55, %v553_v56  ;;  %v2768_v6 = vcombine.high %v541_v1, %v545_v2  ;;  %v358_v55 = vld [vmem:[%s3285_s17 + $0x98] sm:$0xff] }
 0x11f   : > { %2080 = vmatpush1.bf16.msra.mxu0 %v2575_v9  ;;  %v533_v9 = vld [vmem:[%s3285_s17 + $0x610] sm:$0xff]  ;;  %v362_v56 = vld [vmem:[%s3285_s17 + $0xb8] sm:$0xff] }
 0x120   : > { %2081 = vmatprep.subr.bf16.mxu0 %v2568_v11  ;;  %v2639_v11 = vcombine.low %v413_v63, %v417_v0  ;;  %v2586_v63 = vcombine.high %v358_v55, %v362_v56 }
 0x121   : > { %2123 = vmatpush1.bf16.msra.mxu1 %v2703_v10  ;;  %v537_v10 = vld [vmem:[%s3285_s17 + $0x630] sm:$0xff] }
 0x122   : > { %2124 = vmatprep.subr.bf16.mxu1 %v2696_v12  ;;  %v2767_v12 = vcombine.low %v541_v1, %v545_v2  ;;  %v2760_v15 = vcombine.high %v533_v9, %v537_v10  ;;  %v350_v1 = vld [vmem:[%s3285_s17 + $0x58] sm:$0xff] }
 0x123   : > { %2082 = vmatpush1.bf16.msra.mxu0 %v2567_v19  ;;  %v526_v19 = vld [vmem:[%s3285_s17 + $0x5d8] sm:$0xff] }
 0x124   : > { %2083 = vmatprep.subr.bf16.mxu0 %v2688_v21  ;;  %v2631_v21 = vcombine.low %v405_v7, %v409_v8  ;;  %v354_v2 = vld [vmem:[%s3285_s17 + $0x78] sm:$0xff] }
 0x125   : > { %2125 = vmatpush1.bf16.msra.mxu1 %v2695_v20  ;;  %v530_v20 = vld [vmem:[%s3285_s17 + $0x5f8] sm:$0xff]  ;;  %v2578_v7 = vcombine.high %v350_v1, %v354_v2 }
 0x126   : > { %2126 = vmatprep.subr.bf16.mxu1 %v2816_v22  ;;  %v2759_v22 = vcombine.low %v533_v9, %v537_v10  ;;  %v2754_v24 = vcombine.high %v526_v19, %v530_v20  ;;  %v342_v9 = vld [vmem:[%s3285_s17 + $0x18] sm:$0xff] }
 0x127   : > { %2084 = vmatpush2.bf16.msra.mxu0 %v2687_v27  ;;  %v518_v27 = vld [vmem:[%s3285_s17 + $0x598] sm:$0xff] }
 0x128   : > { %2085 = vmatprep.subr.bf16.mxu0 %v2680_v29  ;;  %v2625_v29 = vcombine.low %v398_v17, %v402_v18  ;;  %v346_v10 = vld [vmem:[%s3285_s17 + $0x38] sm:$0xff] }
 0x129   : > { %2127 = vmatpush2.bf16.msra.mxu1 %v2815_v28  ;;  %v522_v28 = vld [vmem:[%s3285_s17 + $0x5b8] sm:$0xff]  ;;  %v2570_v17 = vcombine.high %v342_v9, %v346_v10 }
 0x12a   : > { %2128 = vmatprep.subr.bf16.mxu1 %v2808_v30  ;;  %v2753_v30 = vcombine.low %v526_v19, %v530_v20  ;;  %v2746_v32 = vcombine.high %v518_v27, %v522_v28  ;;  %v462_v19 = vld [vmem:[%s3285_s17 + $0x3d8] sm:$0xff] }
 0x12b   : > { %2086 = vmatpush2.bf16.msra.mxu0 %v2679_v35  ;;  %v510_v35 = vld [vmem:[%s3285_s17 + $0x558] sm:$0xff] }
 0x12c   : > { %2087 = vmatprep.subr.bf16.mxu0 %v2672_v37  ;;  %v2617_v37 = vcombine.low %v390_v25, %v394_v26  ;;  %v466_v20 = vld [vmem:[%s3285_s17 + $0x3f8] sm:$0xff] }
 0x12d   : > { %2129 = vmatpush2.bf16.msra.mxu1 %v2807_v36  ;;  %v514_v36 = vld [vmem:[%s3285_s17 + $0x578] sm:$0xff]  ;;  %v2690_v25 = vcombine.high %v462_v19, %v466_v20 }
 0x12e   : > { %2130 = vmatprep.subr.bf16.mxu1 %v2800_v38  ;;  %v2745_v38 = vcombine.low %v518_v27, %v522_v28  ;;  %v2738_v40 = vcombine.high %v510_v35, %v514_v36  ;;  %v454_v27 = vld [vmem:[%s3285_s17 + $0x398] sm:$0xff] }
 0x12f   : > { %2088 = vmatpush2.bf16.msra.mxu0 %v2671_v43  ;;  %v502_v43 = vld [vmem:[%s3285_s17 + $0x518] sm:$0xff] }
 0x130   : > { %2089 = vmatprep.subr.bf16.mxu0 %v2664_v45  ;;  %v2902_v45 = vld [vmem:[%s3278_s25 + $0xc] ss:$16 sps:$4 sm:$0xff]  }
 0x131   : > { %2131 = vmatpush2.bf16.msra.mxu1 %v2799_v44  ;;  %v506_v44 = vld [vmem:[%s3285_s17 + $0x538] sm:$0xff] }
 0x132   : > { %2132 = vmatprep.subr.bf16.mxu1 %v2792_v46  ;;  %v2737_v46 = vcombine.low %v510_v35, %v514_v36  ;;  %v2730_v57 = vcombine.high %v502_v43, %v506_v44  ;;  %v458_v28 = vld [vmem:[%s3285_s17 + $0x3b8] sm:$0xff] }
 0x133   : > { %2090 = vmatpush2.bf16.msra.mxu0 %v2663_v49  ;;  %v494_v49 = vld [vmem:[%s3285_s17 + $0x4d8] sm:$0xff] }
 0x134   : > { %2091 = vmatprep.subr.bf16.mxu0 %v2656_v51  ;;  %v2601_v51 = vcombine.low %v374_v41, %v378_v42  ;;  %v446_v35 = vld [vmem:[%s3285_s17 + $0x358] sm:$0xff] }
 0x135   : > { %2133 = vmatpush2.bf16.msra.mxu1 %v2791_v50  ;;  %v498_v50 = vld [vmem:[%s3285_s17 + $0x4f8] sm:$0xff] }
 0x136   : > { %2134 = vmatprep.subr.bf16.mxu1 %v2784_v52  ;;  %v2729_v52 = vcombine.low %v502_v43, %v506_v44  ;;  %v2722_v54 = vcombine.high %v494_v49, %v498_v50  ;;  %v450_v36 = vld [vmem:[%s3285_s17 + $0x378] sm:$0xff] }
 0x137   : > { %2092 = vmatpush2.bf16.msra.mxu0 %v2655_v58  ;;  %v486_v58 = vld [vmem:[%s3285_s17 + $0x498] sm:$0xff]  ;;  %v2674_v41 = vcombine.high %v446_v35, %v450_v36 }
 0x138   : > { %2093 = vmatprep.subr.bf16.mxu0 %v2648_v61  ;;  %v2593_v61 = vcombine.low %v366_v48, %v370_v60  ;;  %v442_v43 = vld [vmem:[%s3285_s17 + $0x338] sm:$0xff] }
 0x139   : > { %2135 = vmatpush2.bf16.msra.mxu1 %v2783_v59  ;;  %v490_v59 = vld [vmem:[%s3285_s17 + $0x4b8] sm:$0xff] }
 0x13a   : > { %2136 = vmatprep.subr.bf16.mxu1 %v2776_v62  ;;  %v2721_v62 = vcombine.low %v494_v49, %v498_v50  ;;  %v2714_v0 = vcombine.high %v486_v58, %v490_v59  ;;  %v566_v44 = vld [vmem:[%s3285_s17 + $0x718] sm:$0xff] }
 0x13b   : > { %2094 = vmatpush2.bf16.msra.mxu0 %v2647_v3  ;;  %v478_v3 = vld [vmem:[%s3285_s17 + $0x458] sm:$0xff] }
 0x13c   : > { %2095 = vmatprep.subr.bf16.mxu0 %v2640_v5  ;;  %v2585_v5 = vcombine.low %v358_v55, %v362_v56  ;;  %v430_v48 = vld [vmem:[%s3285_s17 + $0x2d8] sm:$0xff] }
 0x13d   : > { %2137 = vmatpush2.bf16.msra.mxu1 %v2775_v4  ;;  %v482_v4 = vld [vmem:[%s3285_s17 + $0x478] sm:$0xff] }
 0x13e   : > { %2138 = vmatprep.subr.bf16.mxu1 %v2768_v6  ;;  %v2713_v6 = vcombine.low %v486_v58, %v490_v59  ;;  %v2706_v8 = vcombine.high %v478_v3, %v482_v4  ;;  %v434_v60 = vld [vmem:[%s3285_s17 + $0x2f8] sm:$0xff] }
 0x13f   : > { %2096 = vmatpush2.bf16.msra.mxu0 %v2639_v11  ;;  %v470_v11 = vld [vmem:[%s3285_s17 + $0x418] sm:$0xff] }
 0x140   : > { %2097 = vmatprep.subr.bf16.mxu0 %v2632_v14  ;;  %v2577_v14 = vcombine.low %v350_v1, %v354_v2  ;;  %v558_v49 = vld [vmem:[%s3285_s17 + $0x6d8] sm:$0xff] }
 0x141   : > { %2139 = vmatpush2.bf16.msra.mxu1 %v2767_v12  ;;  %v474_v12 = vld [vmem:[%s3285_s17 + $0x438] sm:$0xff] }
 0x142   : > { %2140 = vmatprep.subr.bf16.mxu1 %v2760_v15  ;;  %v2705_v15 = vcombine.low %v478_v3, %v482_v4  ;;  %v2698_v18 = vcombine.high %v470_v11, %v474_v12  ;;  %v562_v50 = vld [vmem:[%s3285_s17 + $0x6f8] sm:$0xff] }
 0x143   : > { %2098 = vmatpush2.bf16.msra.mxu0 %v2631_v21  ;;  %v590_v21 = vld [vmem:[%s3285_s17 + $0x7d8] sm:$0xff] }
 0x144   : > { %2153 = vmatprep.subr.bf16.mxu0 %v2626_v23  ;;  %v2569_v23 = vcombine.low %v342_v9, %v346_v10  ;;  %v422_v55 = vld [vmem:[%s3285_s17 + $0x298] sm:$0xff] }
 0x145   : > { %2141 = vmatpush2.bf16.msra.mxu1 %v2759_v22  ;;  %v594_v22 = vld [vmem:[%s3285_s17 + $0x7f8] sm:$0xff] }
 0x146   : > { %2196 = vmatprep.subr.bf16.mxu1 %v2754_v24  ;;  %2100 = vmatmul.mubr.bf16.vlgmr.msra.gmra.mxu0 %v3380_v13  ;;  %v2901_v13 = vld [vmem:[%s3278_s25 + $0x4] ss:$16 sps:$4 sm:$0xff]   ;;  %v2697_v24 = vcombine.low %v470_v11, %v474_v12  ;;  %v2818_v26 = vcombine.high %v590_v21, %v594_v22  ;;  %v426_v56 = vld [vmem:[%s3285_s17 + $0x2b8] sm:$0xff] }
 0x147   : > { %2154 = vmatpush1.bf16.msra.mxu0 %v2625_v29  ;;  %2185 = vmatprep.mubr.bf16.mxu0 %v2901_v13  ;;  %v582_v29 = vld [vmem:[%s3285_s17 + $0x798] sm:$0xff] }
 0x148   : > { %2143 = vmatmul.mubr.bf16.vlgmr.msra.gmra.mxu1 %v3385_v16  ;;  %2155 = vmatprep.subr.bf16.mxu0 %v2618_v31  ;;  %v2609_v16 = vcombine.low %v382_v33, %v386_v34  ;;  %v2689_v31 = vcombine.low %v462_v19, %v466_v20  ;;  %v2682_v33 = vcombine.high %v454_v27, %v458_v28  ;;  %v438_v13 = vld [vmem:[%s3285_s17 + $0x318] sm:$0xff] }
 0x149   : > { %2197 = vmatpush1.bf16.msra.mxu1 %v2753_v30  ;;  %2228 = vmatprep.mubr.bf16.mxu1 %v2902_v45  ;;  %v586_v30 = vld [vmem:[%s3285_s17 + $0x7b8] sm:$0xff] }
 0x14a   : > { %2198 = vmatprep.subr.bf16.mxu1 %v2746_v32  ;;  %v2817_v32 = vcombine.low %v590_v21, %v594_v22  ;;  %v2810_v34 = vcombine.high %v582_v29, %v586_v30  ;;  %v570_v45 = vld [vmem:[%s3285_s17 + $0x738] sm:$0xff]  ;;  %v2903_v22 = vld [vmem:[%s3278_s25] ss:$16 sps:$4 sm:$0xff]  }
 0x14b   : > { %2156 = vmatpush1.bf16.msra.mxu0 %v2617_v37  ;;  %v574_v37 = vld [vmem:[%s3285_s17 + $0x758] sm:$0xff] }
 0x14c   : > { %2157 = vmatprep.subr.bf16.mxu0 %v2610_v39  ;;  %v2681_v39 = vcombine.low %v454_v27, %v458_v28  ;;  %v550_v58 = vld [vmem:[%s3285_s17 + $0x698] sm:$0xff]  ;;  %v320_v28 = vld [vmem:[#allocation2] sm:$0xff] }
 0x14d   : > { %2199 = vmatpush1.bf16.msra.mxu1 %v2745_v38  ;;  %v578_v38 = vld [vmem:[%s3285_s17 + $0x778] sm:$0xff] }
 0x14e   : > { %2200 = vmatprep.subr.bf16.mxu1 %v2738_v40  ;;  %v2809_v40 = vcombine.low %v582_v29, %v586_v30  ;;  %v2802_v42 = vcombine.high %v574_v37, %v578_v38  ;;  %v554_v59 = vld [vmem:[%s3285_s17 + $0x6b8] sm:$0xff] }
 0x14f   : > { %2158 = vmatpush1.bf16.msra.mxu0 %v2609_v16  ;;  %v2673_v16 = vcombine.low %v446_v35, %v450_v36  ;;  %v414_v1 = vld [vmem:[%s3285_s17 + $0x258] sm:$0xff] }
 0x150   : > { %2159 = vmatprep.subr.bf16.mxu0 %v2602_v47  ;;  %v2666_v47 = vcombine.high %v438_v13, %v442_v43  ;;  %v418_v2 = vld [vmem:[%s3285_s17 + $0x278] sm:$0xff] }
 0x151   : > { %2201 = vmatpush1.bf16.msra.mxu1 %v2737_v46  ;;  %v2801_v46 = vcombine.low %v574_v37, %v578_v38  ;;  %v542_v3 = vld [vmem:[%s3285_s17 + $0x658] sm:$0xff]  ;;  %v328_v38 = vld [vmem:[#allocation2 + $0x20] sm:$0xff] }
 0x152   : > { %2202 = vmatprep.subr.bf16.mxu1 %v2730_v57  ;;  %v2794_v57 = vcombine.high %v566_v44, %v570_v45  ;;  %v546_v4 = vld [vmem:[%s3285_s17 + $0x678] sm:$0xff] }
 0x153   : > { %2160 = vmatpush1.bf16.msra.mxu0 %v2601_v51  ;;  %v2665_v51 = vcombine.low %v438_v13, %v442_v43  ;;  %v406_v9 = vld [vmem:[%s3285_s17 + $0x218] sm:$0xff] }
 0x154   : > { %2161 = vmatprep.subr.bf16.mxu0 %v2594_v53  ;;  %v2658_v53 = vcombine.high %v430_v48, %v434_v60  ;;  %v410_v10 = vld [vmem:[%s3285_s17 + $0x238] sm:$0xff] }
 0x155   : > { %2203 = vmatpush1.bf16.msra.mxu1 %v2729_v52  ;;  %v2793_v52 = vcombine.low %v566_v44, %v570_v45  ;;  %v534_v11 = vld [vmem:[%s3285_s17 + $0x618] sm:$0xff]  ;;  %v2633_v19 = vcombine.low %v406_v9, %v410_v10 }
 0x156   : > { %2204 = vmatprep.subr.bf16.mxu1 %v2722_v54  ;;  %v2786_v54 = vcombine.high %v558_v49, %v562_v50  ;;  %v538_v12 = vld [vmem:[%s3285_s17 + $0x638] sm:$0xff] }
 0x157   : > { %2162 = vmatpush1.bf16.msra.mxu0 %v2593_v61  ;;  %v2657_v61 = vcombine.low %v430_v48, %v434_v60  ;;  %v2761_v20 = vcombine.low %v534_v11, %v538_v12  ;;  %v321_v43 = vld [vmem:[#allocation2 + $0x58] sm:$0xff] }
 0x158   : > { %2163 = vmatprep.subr.bf16.mxu0 %v2586_v63  ;;  %v2650_v63 = vcombine.high %v422_v55, %v426_v56 }
 0x159   : > { %2205 = vmatpush1.bf16.msra.mxu1 %v2721_v62  ;;  %v2785_v62 = vcombine.low %v558_v49, %v562_v50  ;;  %v329_v49 = vld [vmem:[#allocation2 + $0x10] sm:$0xff] }
 0x15a   : > { %2206 = vmatprep.subr.bf16.mxu1 %v2714_v0  ;;  %v2778_v0 = vcombine.high %v550_v58, %v554_v59 }
 0x15b   : > { %2164 = vmatpush1.bf16.msra.mxu0 %v2585_v5  ;;  %v2649_v5 = vcombine.low %v422_v55, %v426_v56 }
 0x15c   : > { %2165 = vmatprep.subr.bf16.mxu0 %v2578_v7  ;;  %v2642_v7 = vcombine.high %v414_v1, %v418_v2 }
 0x15d   : > { %2207 = vmatpush1.bf16.msra.mxu1 %v2713_v6  ;;  %v2777_v6 = vcombine.low %v550_v58, %v554_v59 }
 0x15e   : > { %2208 = vmatprep.subr.bf16.mxu1 %v2706_v8  ;;  %v2770_v8 = vcombine.high %v542_v3, %v546_v4 }
 0x15f   : > { %2166 = vmatpush1.bf16.msra.mxu0 %v2577_v14  ;;  %v2641_v14 = vcombine.low %v414_v1, %v418_v2  ;;  %v324_v2 = vld [vmem:[#allocation2 + $0x68] sm:$0xff] }
 0x160   : > { %2167 = vmatprep.subr.bf16.mxu0 %v2570_v17  ;;  %v2634_v17 = vcombine.high %v406_v9, %v410_v10 }
 0x161   : > { %2209 = vmatpush1.bf16.msra.mxu1 %v2705_v15  ;;  %v2769_v15 = vcombine.low %v542_v3, %v546_v4 }
 0x162   : > { %2210 = vmatprep.subr.bf16.mxu1 %v2698_v18  ;;  %v2762_v18 = vcombine.high %v534_v11, %v538_v12  ;;  %v332_v12 = vld [vmem:[#allocation2 + $0x70] sm:$0xff] }
 0x163   : > { %2168 = vmatpush1.bf16.msra.mxu0 %v2569_v23  ;;  %v319_v23 = vld [vmem:[#allocation2 + $0x30] sm:$0xff] }
 0x164   : > { %2169 = vmatprep.subr.bf16.mxu0 %v2690_v25  ;;  %v2904_v25 = vld [vmem:[%s3278_s25 + $0x8] ss:$16 sps:$4 sm:$0xff]  }
 0x165   : > { %2211 = vmatpush1.bf16.msra.mxu1 %v2697_v24 }
 0x166   : > { %2212 = vmatprep.subr.bf16.mxu1 %v2818_v26 }
 0x167   : > { %2170 = vmatpush2.bf16.msra.mxu0 %v2689_v31 }
 0x168   : > { %2171 = vmatprep.subr.bf16.mxu0 %v2682_v33  ;;  %v327_v33 = vld [vmem:[#allocation2 + $0x40] sm:$0xff] }
 0x169   : > { %2213 = vmatpush2.bf16.msra.mxu1 %v2817_v32 }
 0x16a   : > { %2214 = vmatprep.subr.bf16.mxu1 %v2810_v34 }
 0x16b   : > { %2172 = vmatpush2.bf16.msra.mxu0 %v2681_v39 }
 0x16c   : > { %2173 = vmatprep.subr.bf16.mxu0 %v2674_v41 }
 0x16d   : > { %2215 = vmatpush2.bf16.msra.mxu1 %v2809_v40 }
 0x16e   : > { %2216 = vmatprep.subr.bf16.mxu1 %v2802_v42 }
 0x16f   : > { %2174 = vmatpush2.bf16.msra.mxu0 %v2673_v16 }
 0x170   : > { %2175 = vmatprep.subr.bf16.mxu0 %v2666_v47 }
 0x171   : > { %2217 = vmatpush2.bf16.msra.mxu1 %v2801_v46  ;;  %v322_v46 = vld [vmem:[#allocation2 + $0x18] sm:$0xff] }
 0x172   : > { %2218 = vmatprep.subr.bf16.mxu1 %v2794_v57 }
 0x173   : > { %2176 = vmatpush2.bf16.msra.mxu0 %v2665_v51 }
 0x174   : > { %2177 = vmatprep.subr.bf16.mxu0 %v2658_v53 }
 0x175   : > { %2219 = vmatpush2.bf16.msra.mxu1 %v2793_v52 }
 0x176   : > { %2220 = vmatprep.subr.bf16.mxu1 %v2786_v54  ;;  %v330_v54 = vld [vmem:[#allocation2 + $0x38] sm:$0xff] }
 0x177   : > { %2178 = vmatpush2.bf16.msra.mxu0 %v2657_v61 }
 0x178   : > { %2179 = vmatprep.subr.bf16.mxu0 %v2650_v63 }
 0x179   : > { %2221 = vmatpush2.bf16.msra.mxu1 %v2785_v62  ;;  %v323_v62 = vld [vmem:[#allocation2 + $0x50] sm:$0xff] }
 0x17a   : > { %2222 = vmatprep.subr.bf16.mxu1 %v2778_v0 }
 0x17b   : > { %2180 = vmatpush2.bf16.msra.mxu0 %v2649_v5 }
 0x17c   : > { %2181 = vmatprep.subr.bf16.mxu0 %v2642_v7  ;;  %v331_v7 = vld [vmem:[#allocation2 + $0x60] sm:$0xff] }
 0x17d   : > { %2223 = vmatpush2.bf16.msra.mxu1 %v2777_v6 }
 0x17e   : > { %2224 = vmatprep.subr.bf16.mxu1 %v2770_v8 }
 0x17f   : > { %2182 = vmatpush2.bf16.msra.mxu0 %v2641_v14 }
 0x180   : > { %2183 = vmatprep.subr.bf16.mxu0 %v2634_v17 }
 0x181   : > { %2225 = vmatpush2.bf16.msra.mxu1 %v2769_v15 }
 0x182   : > { %2226 = vmatprep.subr.bf16.mxu1 %v2762_v18 }
 0x183   : > { %2184 = vmatpush2.bf16.msra.mxu0 %v2633_v19 }
 0x185   : > { %2227 = vmatpush2.bf16.msra.mxu1 %v2761_v20  ;;  %v325_v20 = vld [vmem:[#allocation2 + $0x8] sm:$0xff] }
 0x186   : > { %v1929_v21 = vpop.f32.mrf.mxu0  ;;  %2186 = vmatmul.mubr.bf16.vlgmr.msra.gmra.mxu0 %v2903_v22 }
 0x188   : > { %v1972_v24 = vpop.f32.mrf.mxu1  ;;  %2229 = vmatmul.mubr.bf16.vlgmr.msra.gmra.mxu1 %v2904_v25  ;;  %v1931_v27 = vpop.f32.mrf.mxu0 }
 0x189   : > { %v1973_v26 = vadd.f32 %v1972_v24, %v1929_v21  ;;  %v326_v24 = vld [vmem:[#allocation2 + $0x48] sm:$0xff] }
 0x18a   : > { %v1974_v29 = vpop.f32.mrf.mxu1  ;;  %v1933_v32 = vpop.f32.mrf.mxu0 }
 0x18b   : > { %v2239_v30 = vadd.f32 %v1973_v26, %v319_v23  ;;  %v1975_v31 = vadd.f32 %v1974_v29, %v1931_v27  ;;  %v333_v29 = vld [vmem:[#allocation2 + $0x78] sm:$0xff] }
 0x18c   : > { %v1976_v34 = vpop.f32.mrf.mxu1  ;;  %v1935_v37 = vpop.f32.mrf.mxu0 }
 0x18d   : > { %2255 = vst [vmem:[#allocation2 + $0x30] sm:$0xff] %v2239_v30  ;;  %v2240_v35 = vadd.f32 %v1975_v31, %v320_v28  ;;  %v1977_v36 = vadd.f32 %v1976_v34, %v1933_v32  ;;  %v334_v34 = vld [vmem:[#allocation2 + $0x28] sm:$0xff] }
 0x18e   : > { %v1978_v39 = vpop.f32.mrf.mxu1 }
 0x18f   : > { %2256 = vst [vmem:[#allocation2] sm:$0xff] %v2240_v35  ;;  %v2247_v40 = vadd.f32 %v1977_v36, %v327_v33  ;;  %v1979_v41 = vadd.f32 %v1978_v39, %v1935_v37 }
 0x191   : > { %2263 = vst [vmem:[#allocation2 + $0x40] sm:$0xff] %v2247_v40  ;;  %v2248_v42 = vadd.f32 %v1979_v41, %v328_v38 }
 0x193   : > { %2264 = vst [vmem:[#allocation2 + $0x20] sm:$0xff] %v2248_v42 }
 0x1c6   : > { %v2015_v13 = vpop.f32.mrf.mxu0 }
 0x1c8   : > { %v2058_v44 = vpop.f32.mrf.mxu1  ;;  %v2017_v16 = vpop.f32.mrf.mxu0 }
 0x1c9   : > { %v2059_v45 = vadd.f32 %v2058_v44, %v2015_v13 }
 0x1ca   : > { %v2060_v47 = vpop.f32.mrf.mxu1  ;;  %v2019_v60 = vpop.f32.mrf.mxu0 }
 0x1cb   : > { %v2241_v57 = vadd.f32 %v2059_v45, %v321_v43  ;;  %v2061_v48 = vadd.f32 %v2060_v47, %v2017_v16 }
 0x1cc   : > { %v2062_v50 = vpop.f32.mrf.mxu1  ;;  %v2021_v53 = vpop.f32.mrf.mxu0 }
 0x1cd   : > { %2257 = vst [vmem:[#allocation2 + $0x58] sm:$0xff] %v2241_v57  ;;  %v2242_v51 = vadd.f32 %v2061_v48, %v322_v46  ;;  %v2063_v52 = vadd.f32 %v2062_v50, %v2019_v60 }
 0x1ce   : > { %v2064_v55 = vpop.f32.mrf.mxu1 }
 0x1cf   : > { %2258 = vst [vmem:[#allocation2 + $0x18] sm:$0xff] %v2242_v51  ;;  %v2249_v56 = vadd.f32 %v2063_v52, %v329_v49  ;;  %v2065_v58 = vadd.f32 %v2064_v55, %v2021_v53 }
 0x1d1   : > { %2265 = vst [vmem:[#allocation2 + $0x10] sm:$0xff] %v2249_v56  ;;  %v2250_v59 = vadd.f32 %v2065_v58, %v330_v54 }
 0x1d3   : > { %2266 = vst [vmem:[#allocation2 + $0x38] sm:$0xff] %v2250_v59 }
 0x206   : > { %v2101_v61 = vpop.f32.mrf.mxu0 }
 0x208   : > { %v2144_v63 = vpop.f32.mrf.mxu1  ;;  %v2103_v1 = vpop.f32.mrf.mxu0 }
 0x209   : > { %v2145_v0 = vadd.f32 %v2144_v63, %v2101_v61 }
 0x20a   : > { %v2146_v3 = vpop.f32.mrf.mxu1  ;;  %v2105_v6 = vpop.f32.mrf.mxu0 }
 0x20b   : > { %v2243_v4 = vadd.f32 %v2145_v0, %v323_v62  ;;  %v2147_v5 = vadd.f32 %v2146_v3, %v2103_v1 }
 0x20c   : > { %v2148_v8 = vpop.f32.mrf.mxu1  ;;  %v2107_v11 = vpop.f32.mrf.mxu0 }
 0x20d   : > { %2259 = vst [vmem:[#allocation2 + $0x50] sm:$0xff] %v2243_v4  ;;  %v2244_v9 = vadd.f32 %v2147_v5, %v324_v2  ;;  %v2149_v10 = vadd.f32 %v2148_v8, %v2105_v6 }
 0x20e   : > { %v2150_v14 = vpop.f32.mrf.mxu1 }
 0x20f   : > { %2260 = vst [vmem:[#allocation2 + $0x68] sm:$0xff] %v2244_v9  ;;  %v2251_v15 = vadd.f32 %v2149_v10, %v331_v7  ;;  %v2151_v17 = vadd.f32 %v2150_v14, %v2107_v11 }
 0x211   : > { %2267 = vst [vmem:[#allocation2 + $0x60] sm:$0xff] %v2251_v15  ;;  %v2252_v18 = vadd.f32 %v2151_v17, %v332_v12 }
 0x213   : > { %2268 = vst [vmem:[#allocation2 + $0x70] sm:$0xff] %v2252_v18 }
 0x246   : > { %v2187_v19 = vpop.f32.mrf.mxu0 }
 0x248   : > { %v2230_v21 = vpop.f32.mrf.mxu1  ;;  %v2189_v23 = vpop.f32.mrf.mxu0 }
 0x249   : > { %v2231_v22 = vadd.f32 %v2230_v21, %v2187_v19 }
 0x24a   : > { %v2232_v25 = vpop.f32.mrf.mxu1  ;;  %v2191_v28 = vpop.f32.mrf.mxu0 }
 0x24b   : > { %v2245_v26 = vadd.f32 %v2231_v22, %v325_v20  ;;  %v2233_v27 = vadd.f32 %v2232_v25, %v2189_v23 }
 0x24c   : > { %v2234_v30 = vpop.f32.mrf.mxu1  ;;  %v2193_v33 = vpop.f32.mrf.mxu0 }
 0x24d   : > { %2261 = vst [vmem:[#allocation2 + $0x8] sm:$0xff] %v2245_v26  ;;  %v2246_v31 = vadd.f32 %v2233_v27, %v326_v24  ;;  %v2235_v32 = vadd.f32 %v2234_v30, %v2191_v28 }
 0x24e   : > { %v2236_v35 = vpop.f32.mrf.mxu1 }
 0x24f   : > { %2262 = vst [vmem:[#allocation2 + $0x48] sm:$0xff] %v2246_v31  ;;  %v2253_v36 = vadd.f32 %v2235_v32, %v333_v29  ;;  %v2237_v37 = vadd.f32 %v2236_v35, %v2193_v33  ;;  %2274 = sbr.rel (%p2819_p12) target bundleno = 806 (0x326), region = 64 }
 0x251   : > { %2269 = vst [vmem:[#allocation2 + $0x78] sm:$0xff] %v2253_v36  ;;  %v2254_v38 = vadd.f32 %v2237_v37, %v334_v34 }
 0x253   : > { %2270 = vst [vmem:[#allocation2 + $0x28] sm:$0xff] %v2254_v38 }
 0x254   : > { %v2293_v39 = vlaneseq  ;;  %v2291_v41 = vld [vmem:[#allocation8] sm:$0xff]  ;;  %v2275_v42 = vld [vmem:[#allocation2 + $0x30] sm:$0xff]  ;;  %v2277_v46 = vld [vmem:[#allocation2 + $0x58] sm:$0xff]  ;;  %vm2457_vm0 = vcmask 7168  }
 0x255   : > { %v2276_v16 = vld [vmem:[#allocation2] sm:$0xff]  ;;  %v2278_v47 = vld [vmem:[#allocation2 + $0x18] sm:$0xff]  ;;  %v2279_v49 = vld [vmem:[#allocation2 + $0x50] sm:$0xff] }
 0x256   : > { %v3586_v40 = vshrl.u32 %v2293_v39, 7  ;;  %v2280_v58 = vld [vmem:[#allocation2 + $0x68] sm:$0xff]  ;;  %v2283_v19 = vld [vmem:[#allocation2 + $0x40] sm:$0xff]  ;;  %v2285_v21 = vld [vmem:[#allocation2 + $0x10] sm:$0xff] }
 0x257   : > { %v2365_v2 = vld [vmem:[#allocation9] sm:$0xff]  ;;  %v2284_v20 = vld [vmem:[#allocation2 + $0x20] sm:$0xff]  ;;  %v2286_v26 = vld [vmem:[#allocation2 + $0x38] sm:$0xff] }
 0x258   : > { %v2295_v13 = vsub.s32 0, %v3586_v40  ;;  %v2299_v43 = vsub.s32 1, %v3586_v40  ;;  %v2303_v44 = vsub.s32 2, %v3586_v40  ;;  %v2307_v45 = vsub.s32 3, %v3586_v40  ;;  %v2281_v3 = vld [vmem:[#allocation2 + $0x8] sm:$0xff]  ;;  %v2287_v27 = vld [vmem:[#allocation2 + $0x60] sm:$0xff] }
 0x259   : > { %v2311_v57 = vsub.s32 4, %v3586_v40  ;;  %v2315_v48 = vsub.s32 5, %v3586_v40  ;;  %v2319_v60 = vsub.s32 6, %v3586_v40  ;;  %v2323_v56 = vsub.s32 7, %v3586_v40  ;;  %v2282_v10 = vld [vmem:[#allocation2 + $0x48] sm:$0xff]  ;;  %v2288_v33 = vld [vmem:[#allocation2 + $0x70] sm:$0xff] }
 0x25a   : > { %v2296_v50 = vrot.slane %v2291_v41, %v2295_v13  ;;  %v2300_v51 = vrot.slane %v2291_v41, %v2299_v43  ;;  %v2304_v52 = vrot.slane %v2291_v41, %v2303_v44  ;;  %v2308_v53 = vrot.slane %v2291_v41, %v2307_v45 }
 0x25b   : > { %v2312_v54 = vrot.slane %v2291_v41, %v2311_v57  ;;  %v2316_v55 = vrot.slane %v2291_v41, %v2315_v48  ;;  %v2320_v0 = vrot.slane %v2291_v41, %v2319_v60  ;;  %v2324_v7 = vrot.slane %v2291_v41, %v2323_v56 }
 0x25c   : > { %v2333_v59 = vadd.f32 %v2296_v50, %v2275_v42  ;;  %v2334_v61 = vadd.f32 %v2300_v51, %v2276_v16  ;;  %v2335_v62 = vadd.f32 %v2304_v52, %v2277_v46  ;;  %v2336_v63 = vadd.f32 %v2308_v53, %v2278_v47 }
 0x25d   : > { %v2337_v1 = vadd.f32 %v2312_v54, %v2279_v49  ;;  %v2338_v8 = vadd.f32 %v2316_v55, %v2280_v58  ;;  %v2370_v11 = vrot.slane %v2365_v2, %v2295_v13  ;;  %v2374_v12 = vrot.slane %v2365_v2, %v2299_v43  ;;  %v2289_v13 = vld [vmem:[#allocation2 + $0x78] sm:$0xff]  ;;  %v2290_v58 = vld [vmem:[#allocation2 + $0x28] sm:$0xff] }
 0x25e   : > { %v2349_v4 = vmax.f32 %v2333_v59, 0.0  ;;  %v2350_v5 = vmax.f32 %v2334_v61, 0.0  ;;  %v2351_v6 = vmax.f32 %v2335_v62, 0.0  ;;  %v2352_v9 = vmax.f32 %v2336_v63, 0.0 }
 0x25f   : > { %v2378_v14 = vrot.slane %v2365_v2, %v2303_v44  ;;  %v2382_v15 = vrot.slane %v2365_v2, %v2307_v45  ;;  %v2339_v17 = vadd.f32 %v2320_v0, %v2281_v3  ;;  %v2353_v18 = vmax.f32 %v2337_v1, 0.0 }
 0x260   : > { %v2386_v22 = vrot.slane %v2365_v2, %v2311_v57  ;;  %v2407_v23 = vmul.f32 %v2370_v11, %v2349_v4  ;;  %v2408_v24 = vmul.f32 %v2374_v12, %v2350_v5  ;;  %v2340_v28 = vadd.f32 %v2324_v7, %v2282_v10 }
 0x261   : > { %v2409_v25 = vmul.f32 %v2378_v14, %v2351_v6  ;;  %v2354_v29 = vmax.f32 %v2338_v8, 0.0  ;;  %v2390_v30 = vrot.slane %v2365_v2, %v2315_v48  ;;  %v2410_v31 = vmul.f32 %v2382_v15, %v2352_v9 }
 0x262   : > { %v2423_v32 = vadd.f32 %v2408_v24, %v2407_v23  ;;  %v2341_v34 = vadd.f32 %v2296_v50, %v2283_v19  ;;  %v2342_v35 = vadd.f32 %v2300_v51, %v2284_v20  ;;  %v2343_v36 = vadd.f32 %v2304_v52, %v2285_v21 }
 0x263   : > { %v2355_v37 = vmax.f32 %v2339_v17, 0.0  ;;  %v2394_v38 = vrot.slane %v2365_v2, %v2319_v60  ;;  %v2344_v39 = vadd.f32 %v2308_v53, %v2286_v26  ;;  %v2345_v40 = vadd.f32 %v2312_v54, %v2287_v27 }
 0x264   : > { %v2411_v41 = vmul.f32 %v2386_v22, %v2353_v18  ;;  %v2424_v42 = vadd.f32 %v2423_v32, %v2409_v25  ;;  %v2357_v43 = vmax.f32 %v2341_v34, 0.0  ;;  %v2358_v44 = vmax.f32 %v2342_v35, 0.0 }
 0x265   : > { %v2356_v45 = vmax.f32 %v2340_v28, 0.0  ;;  %v2346_v16 = vadd.f32 %v2316_v55, %v2288_v33  ;;  %v2359_v46 = vmax.f32 %v2343_v36, 0.0  ;;  %v2360_v47 = vmax.f32 %v2344_v39, 0.0 }
 0x266   : > { %v2398_v57 = vrot.slane %v2365_v2, %v2323_v56  ;;  %v2412_v48 = vmul.f32 %v2390_v30, %v2354_v29  ;;  %v2425_v49 = vadd.f32 %v2424_v42, %v2410_v31  ;;  %v2415_v50 = vmul.f32 %v2370_v11, %v2357_v43 }
 0x267   : > { %v2347_v51 = vadd.f32 %v2320_v0, %v2289_v13  ;;  %v2361_v52 = vmax.f32 %v2345_v40, 0.0  ;;  %v2416_v59 = vmul.f32 %v2374_v12, %v2358_v44  ;;  %v2417_v60 = vmul.f32 %v2378_v14, %v2359_v46 }
 0x268   : > { %v2413_v53 = vmul.f32 %v2394_v38, %v2355_v37  ;;  %v2426_v54 = vadd.f32 %v2425_v49, %v2411_v41  ;;  %v2348_v61 = vadd.f32 %v2324_v7, %v2290_v58  ;;  %v2362_v62 = vmax.f32 %v2346_v16, 0.0 }
 0x269   : > { %v2418_v63 = vmul.f32 %v2382_v15, %v2360_v47  ;;  %v2432_v1 = vadd.f32 %v2416_v59, %v2415_v50  ;;  %v2414_v3 = vmul.f32 %v2398_v57, %v2356_v45  ;;  %v2363_v55 = vmax.f32 %v2347_v51, 0.0 }
 0x26a   : > { %v2427_v4 = vadd.f32 %v2426_v54, %v2412_v48  ;;  %v2419_v5 = vmul.f32 %v2386_v22, %v2361_v52  ;;  %v2364_v2 = vmax.f32 %v2348_v61, 0.0  ;;  %v2420_v8 = vmul.f32 %v2390_v30, %v2362_v62 }
 0x26b   : > { %v2433_v6 = vadd.f32 %v2432_v1, %v2417_v60  ;;  %v2421_v0 = vmul.f32 %v2394_v38, %v2363_v55  ;;  %v2442_v15 = vstv %s2441_s4 }
 0x26c   : > { %v2428_v56 = vadd.f32 %v2427_v4, %v2413_v53  ;;  %v2422_v12 = vmul.f32 %v2398_v57, %v2364_v2 }
 0x26d   : > { %v2434_v9 = vadd.f32 %v2433_v6, %v2418_v63 }
 0x26e   : > { %v2429_v10 = vadd.f32 %v2428_v56, %v2414_v3 }
 0x26f   : > { %v2435_v11 = vadd.f32 %v2434_v9, %v2419_v5 }
 0x270   : > { %2430 = vadd.xlane.f32.xlu0 %v2429_v10 }
 0x271   : > { %v2436_v14 = vadd.f32 %v2435_v11, %v2420_v8 }
 0x273   : > { %v2437_v17 = vadd.f32 %v2436_v14, %v2421_v0 }
 0x275   : > { %v2438_v7 = vadd.f32 %v2437_v17, %v2422_v12 }
 0x277   : > { %2439 = vadd.xlane.f32.xlu0 %v2438_v7 }
 0x2f9   : > { %v2431_v18 = vpop.xlane.xlu0 %2430 }
 0x2fa   : > { %v2443_v19 = vadd.f32 %v2442_v15, %v2431_v18 }
 0x2fc   : > { %v2445_v20 = vsub.f32 0.0, %v2443_v19 }
 0x2fe   : > { %v2447_v21 = vmul.f32 1.442695, %v2445_v20 }
 0x300   : > { %2905 = vpow2.f32 %v2447_v21  ;;  %v2440_v22 = vpop.xlane.xlu0 %2439 }
 0x301   : > { %v2444_v23 = vadd.f32 %v2442_v15, %v2440_v22 }
 0x303   : > { %v2446_v24 = vsub.f32 0.0, %v2444_v23 }
 0x305   : > { %v2449_v25 = vmul.f32 1.442695, %v2446_v24 }
 0x307   : > { %2907 = vpow2.f32 %v2449_v25 }
 0x30d   : > { %v2906_v26 = vpop.eup %2905 }
 0x30e   : > { %v2451_v27 = vadd.f32 1.0, %v2906_v26 }
 0x310   : > { %2909 = vrcp.f32 %v2451_v27 }
 0x314   : > { %v2908_v28 = vpop.eup %2907 }
 0x315   : > { %v2452_v29 = vadd.f32 1.0, %v2908_v28 }
 0x317   : > { %2911 = vrcp.f32 %v2452_v29 }
 0x31d   : > { %v2910_v30 = vpop.eup %2909 }
 0x31e   : > { %2458 = vst.msk [vmem:[%s3620_s5] sm:$0xff] %vm2457_vm0, %v2910_v30 }
 0x324   : > { %v2912_v31 = vpop.eup %2911 }
 0x325   : > { %2459 = vst.msk [vmem:[%s3620_s5 + $0x8] sm:$0xff] %vm2457_vm0, %v2912_v31 }
 0x326 PF: > { %p20_p2 = scmp.ge.s32.totalorder %s3133_s24, 4   ;;  %s3638_s20 = smov %s3059_s21 }
 0x327   : > { %s3639_s21 = smov %s3063_s22  ;;  %s3640_s22 = smov %s3143_s27 }
 0x328   : > { %s3641_s23 = smov %s3133_s24  ;;  %22 = sbr.rel (!%p20_p2) target bundleno = 8 (0x8), region = 105 }
 0x32d   :  { %2471 = vsyncpa [#allocation5], 1 }
 0x32e   :  { %2473 = vsyncpa [#allocation5 + $0x1], 1 }
 0x32f   :  { %2474 = vsyncpa [#allocation7], 1 }
 0x330   :  { %2476 = vsyncpa [#allocation7 + $0x1], 1 }
 0x331   :  { %2477 = vsyncpa [#allocation10], 1 }

</bundles_post_ra>
